<compile_context>
chip_gen: v7x
topology: tpu7x:2x2x1
jax: 0.10.0
libtpu: 0.0.40
codegen_flags: <defaults>
</compile_context>

<pallas_src>
import math

import jax
import jax.numpy as jnp
from jax.experimental import pallas as pl
from jax.experimental.pallas import tpu as pltpu

# ---------------- config (small, consistent with the module) ----------------
D_MODEL = 32       # config.d_model
D_FF = 64          # config.d_ff
N_HEADS = 4        # config.h
N_LAYERS = 2       # config.N
OUTPUT_SIZE = 4    # config.output_size
VOCAB = 50         # src_vocab
SEQ = 8
BATCH = 2
EPS = 1e-6

D_K = D_MODEL // N_HEADS
VOCAB_PAD = 128    # lane-aligned embedding table (one-hot gather on the MXU)
OUT_PAD = 128      # lane-dense output / f32-slab width
NEG_INF = -1e9

# bf16 weight slab layout: per layer a 32-row block with lanes
#   [0:96)  Wqkv (q already scaled by 1/sqrt(dk))
#   [96:128) Wo^T
#   [128:192) W1
#   [192:256) W2^T
# plus one final 32-row block holding fc_w (padded to 128 lanes) in lanes [0:128).
W_LANES = 4 * D_MODEL + 2 * D_FF          # 256
W_ROWS = (N_LAYERS + 1) * D_MODEL         # 96

# f32 slab layout (128 lanes wide):
#   per layer (8 rows): ln1_g, ln1_b, bqkv(96 lanes, bq pre-scaled), bo, ln2_g, ln2_b, b1, b2
#   then: lnf_g, lnf_b, fc_b(128 lanes, NEG_INF padding), zero pad, PE (SEQ rows, 8-aligned)
R_LNF = N_LAYERS * 8                      # 16
R_FCB = R_LNF + 2                         # 18
R_PE = ((R_FCB + 1 + 7) // 8) * 8         # 24 (8-aligned so the PE read is a full tile)
FB_ROWS = R_PE + SEQ                      # 32


# ------------------------------ in-kernel helpers -----------------------------
def _layer_norm(x, gamma, beta, d):
    # Annotated-Transformer LayerNorm: a2*(x-mean)/(std+eps)+b2, torch.std unbiased.
    mean = jnp.mean(x, axis=-1, keepdims=True)
    var = jnp.sum((x - mean) ** 2, axis=-1, keepdims=True) / (d - 1)
    std = jnp.sqrt(var)
    return gamma * (x - mean) / (std + EPS) + beta


def _softmax_attn(s):
    # approx reciprocal (EUP slot) is fine for attention weights
    m = jnp.max(s, axis=-1, keepdims=True)
    e = jnp.exp(s - m)
    return e * pl.reciprocal(jnp.sum(e, axis=-1, keepdims=True), approx=True)


# ----------------------------- fused Pallas kernel ---------------------------
def fused_transformer_kernel(ids_ref, tok_ref, wbf_ref, fb_ref, out_ref):
    # one grid step == one batch element: activations are (SEQ, D)
    # ---- embedding: one-hot gather on the MXU, *sqrt(d), + positional encoding ----
    ids = ids_ref[...]                                                   # (S, 1) int32
    lanes = jax.lax.broadcasted_iota(jnp.int32, (SEQ, VOCAB_PAD), 1)
    onehot = (lanes == ids).astype(jnp.float32).astype(jnp.bfloat16)     # (S, Vp) exact 0/1
    h = jnp.dot(onehot, tok_ref[...], preferred_element_type=jnp.float32)
    h = h * math.sqrt(D_MODEL) + fb_ref[R_PE:R_PE + SEQ, 0:D_MODEL]      # (S, D) f32

    for l in range(N_LAYERS):            # unrolled, N_LAYERS is tiny and static
        r0 = l * 8
        w0 = l * D_MODEL
        wqkv = wbf_ref[w0:w0 + D_MODEL, 0:3 * D_MODEL]                       # (D, 3D) bf16
        woT = wbf_ref[w0:w0 + D_MODEL, 3 * D_MODEL:4 * D_MODEL]              # (D, D)
        w1 = wbf_ref[w0:w0 + D_MODEL, 4 * D_MODEL:4 * D_MODEL + D_FF]        # (D, F)
        w2T = wbf_ref[w0:w0 + D_MODEL, 4 * D_MODEL + D_FF:4 * D_MODEL + 2 * D_FF]  # (D, F)

        # ---------- self-attention sublayer: h += MHA(LN(h)) ----------
        xn = _layer_norm(h, fb_ref[r0:r0 + 1, 0:D_MODEL],
                         fb_ref[r0 + 1:r0 + 2, 0:D_MODEL], D_MODEL)
        # fused QKV projection: one MXU push; q columns carry the folded 1/sqrt(dk)
        qkv = jnp.dot(xn.astype(jnp.bfloat16), wqkv,
                      preferred_element_type=jnp.float32) \
            + fb_ref[r0 + 2:r0 + 3, 0:3 * D_MODEL]                           # (S, 3D) f32

        attn = jnp.zeros((SEQ, D_MODEL), jnp.float32)
        for hd in range(N_HEADS):        # static lane slices, no weight matmuls per head
            q = qkv[:, hd * D_K:(hd + 1) * D_K].astype(jnp.bfloat16)
            k = qkv[:, D_MODEL + hd * D_K:D_MODEL + (hd + 1) * D_K].astype(jnp.bfloat16)
            v = qkv[:, 2 * D_MODEL + hd * D_K:2 * D_MODEL + (hd + 1) * D_K].astype(jnp.bfloat16)
            s = jax.lax.dot_general(q, k, (((1,), (1,)), ((), ())),
                                    preferred_element_type=jnp.float32)      # (S, S)
            p = _softmax_attn(s).astype(jnp.bfloat16)
            ho = jnp.dot(p, v, preferred_element_type=jnp.float32).astype(jnp.bfloat16)
            # project this head straight through its lanes of Wo^T and accumulate
            attn = attn + jax.lax.dot_general(
                ho, woT[:, hd * D_K:(hd + 1) * D_K], (((1,), (1,)), ((), ())),
                preferred_element_type=jnp.float32)                          # (S, D)
        h = h + attn + fb_ref[r0 + 3:r0 + 4, 0:D_MODEL]

        # ---------- feed-forward sublayer: h += W2(relu(W1(LN(h)))) ----------
        xn2 = _layer_norm(h, fb_ref[r0 + 4:r0 + 5, 0:D_MODEL],
                          fb_ref[r0 + 5:r0 + 6, 0:D_MODEL], D_MODEL)
        hid = jnp.dot(xn2.astype(jnp.bfloat16), w1,
                      preferred_element_type=jnp.float32) + fb_ref[r0 + 6:r0 + 7, 0:D_FF]
        hid = jnp.maximum(hid, 0.0)
        ff = jax.lax.dot_general(hid.astype(jnp.bfloat16), w2T, (((1,), (1,)), ((), ())),
                                 preferred_element_type=jnp.float32) \
            + fb_ref[r0 + 7:r0 + 8, 0:D_MODEL]
        h = h + ff

    # ---- final encoder LayerNorm + fc + EXACT softmax (all rows; wrapper keeps last) ----
    xn = _layer_norm(h, fb_ref[R_LNF:R_LNF + 1, 0:D_MODEL],
                     fb_ref[R_LNF + 1:R_LNF + 2, 0:D_MODEL], D_MODEL)
    fcw = wbf_ref[N_LAYERS * D_MODEL:(N_LAYERS + 1) * D_MODEL, 0:OUT_PAD]    # (D, 128) bf16
    logits = jnp.dot(xn.astype(jnp.bfloat16), fcw,
                     preferred_element_type=jnp.float32) + fb_ref[R_FCB:R_FCB + 1, 0:OUT_PAD]
    # padded lanes carry a -1e9 bias -> exp() == 0, so softmax matches the 4-way one
    m = jnp.max(logits, axis=-1, keepdims=True)
    e = jnp.exp(logits - m)
    out_ref[...] = e / jnp.sum(e, axis=-1, keepdims=True)                    # (S, 128) f32


# ------------------------------ parameters & packing ---------------------------
def _positional_encoding(seq, d):
    pos = jnp.arange(seq, dtype=jnp.float32)[:, None]
    i = jnp.arange(0, d, 2, dtype=jnp.float32)
    div = jnp.exp(-math.log(10000.0) * i / d)
    pe = jnp.zeros((seq, d), jnp.float32)
    pe = pe.at[:, 0::2].set(jnp.sin(pos * div))
    pe = pe.at[:, 1::2].set(jnp.cos(pos * div))
    return pe


def init_params(key):
    keys = iter(jax.random.split(key, 2 + 6 * N_LAYERS))

    def dense(shape, scale=0.02):
        return (scale * jax.random.normal(next(keys), shape)).astype(jnp.float32)

    params = {
        'tok_emb': dense((VOCAB, D_MODEL), 0.1),
        'lnf_g': jnp.ones((1, D_MODEL), jnp.float32),
        'lnf_b': jnp.zeros((1, D_MODEL), jnp.float32),
        'fc_w': dense((D_MODEL, OUTPUT_SIZE)),
        'fc_b': jnp.zeros((1, OUTPUT_SIZE), jnp.float32),
        'layers': [],
    }
    for _ in range(N_LAYERS):
        params['layers'].append({
            'ln1_g': jnp.ones((1, D_MODEL), jnp.float32),
            'ln1_b': jnp.zeros((1, D_MODEL), jnp.float32),
            'wq': dense((D_MODEL, D_MODEL)), 'bq': jnp.zeros((1, D_MODEL), jnp.float32),
            'wk': dense((D_MODEL, D_MODEL)), 'bk': jnp.zeros((1, D_MODEL), jnp.float32),
            'wv': dense((D_MODEL, D_MODEL)), 'bv': jnp.zeros((1, D_MODEL), jnp.float32),
            'wo': dense((D_MODEL, D_MODEL)), 'bo': jnp.zeros((1, D_MODEL), jnp.float32),
            'ln2_g': jnp.ones((1, D_MODEL), jnp.float32),
            'ln2_b': jnp.zeros((1, D_MODEL), jnp.float32),
            'w1': dense((D_MODEL, D_FF)), 'b1': jnp.zeros((1, D_FF), jnp.float32),
            'w2': dense((D_FF, D_MODEL)), 'b2': jnp.zeros((1, D_MODEL), jnp.float32),
        })
    return params


def pack_params(params):
    """Run ONCE (outside jit): fold scales, pack all weights into 3 VMEM-resident slabs."""
    inv_sq = 1.0 / math.sqrt(D_K)

    def frow(vec, width, fill=0.0):
        r = jnp.full((1, OUT_PAD), fill, jnp.float32)
        return r.at[:, :width].set(jnp.asarray(vec, jnp.float32).reshape(1, width))

    wrows, frows = [], []
    for lp in params['layers']:
        wqkv = jnp.concatenate([lp['wq'] * inv_sq, lp['wk'], lp['wv']], axis=1)   # (D, 3D)
        wrows.append(jnp.concatenate([wqkv, lp['wo'].T, lp['w1'], lp['w2'].T], axis=1))
        bqkv = jnp.concatenate([lp['bq'] * inv_sq, lp['bk'], lp['bv']], axis=1)   # (1, 3D)
        frows += [frow(lp['ln1_g'], D_MODEL), frow(lp['ln1_b'], D_MODEL),
                  frow(bqkv, 3 * D_MODEL), frow(lp['bo'], D_MODEL),
                  frow(lp['ln2_g'], D_MODEL), frow(lp['ln2_b'], D_MODEL),
                  frow(lp['b1'], D_FF), frow(lp['b2'], D_MODEL)]

    fc_block = jnp.zeros((D_MODEL, W_LANES), jnp.float32)
    fc_block = fc_block.at[:, :OUTPUT_SIZE].set(params['fc_w'])
    wrows.append(fc_block)
    wbf = jnp.concatenate(wrows, axis=0).astype(jnp.bfloat16)                     # (96, 256)

    frows += [frow(params['lnf_g'], D_MODEL), frow(params['lnf_b'], D_MODEL),
              frow(params['fc_b'], OUTPUT_SIZE, fill=NEG_INF)]
    fb = jnp.concatenate(frows, axis=0)                                           # (19, 128)
    fb = jnp.concatenate([fb, jnp.zeros((R_PE - fb.shape[0], OUT_PAD), jnp.float32)], axis=0)
    pe_pad = jnp.zeros((SEQ, OUT_PAD), jnp.float32).at[:, :D_MODEL].set(
        _positional_encoding(SEQ, D_MODEL))
    fb = jnp.concatenate([fb, pe_pad], axis=0)                                    # (32, 128)
    assert fb.shape == (FB_ROWS, OUT_PAD)

    tok = (jnp.zeros((VOCAB_PAD, D_MODEL), jnp.float32)
           .at[:VOCAB].set(params['tok_emb']).astype(jnp.bfloat16))               # (128, 32)

    return {'tok': tok, 'wbf': wbf, 'fb': fb}


# ----------------------------------- forward ----------------------------------
@jax.jit
def transformer_forward(packed, x_seq_batch):
    """x_seq_batch: (seq, batch) int32 token ids (same layout as the PyTorch module)."""
    x = jnp.transpose(x_seq_batch)                       # x.permute(1, 0) -> (B, S)
    ids = x.reshape(BATCH * SEQ, 1).astype(jnp.int32)

    out = pl.pallas_call(
        fused_transformer_kernel,
        out_shape=jax.ShapeDtypeStruct((BATCH * SEQ, OUT_PAD), jnp.float32),
        grid=(BATCH,),                                   # one batch element per grid step
        in_specs=[
            pl.BlockSpec((SEQ, 1), lambda b: (b, 0)),                  # ids (per batch elem)
            pl.BlockSpec((VOCAB_PAD, D_MODEL), lambda b: (0, 0)),      # bf16 embedding table
            pl.BlockSpec((W_ROWS, W_LANES), lambda b: (0, 0)),         # bf16 weight slab
            pl.BlockSpec((FB_ROWS, OUT_PAD), lambda b: (0, 0)),        # f32 LN/bias/PE slab
        ],
        out_specs=pl.BlockSpec((SEQ, OUT_PAD), lambda b: (b, 0)),
        compiler_params=pltpu.CompilerParams(
            dimension_semantics=("parallel",)),          # uses both TCs on v7x
    )(ids, packed['tok'], packed['wbf'], packed['fb'])

    # encoded_sents[:, -1, :] -> fc -> softmax; padded lanes are exactly zero probability
    return out.reshape(BATCH, SEQ, OUT_PAD)[:, -1, :OUTPUT_SIZE]


# ----------------------------------- main ------------------------------------
if __name__ == "__main__":
    key = jax.random.PRNGKey(0)
    kp, kx = jax.random.split(key)

    params = init_params(kp)
    packed = pack_params(params)     # hoisted prep: runs once, outside the jitted forward

    # (seq, batch) token ids, matching the PyTorch module's input layout.
    x = jax.random.randint(kx, (SEQ, BATCH), 1, VOCAB, dtype=jnp.int32)

    probs = transformer_forward(packed, x)
    jax.block_until_ready(probs)
    assert probs.shape == (BATCH, OUTPUT_SIZE)
    assert bool(jnp.all(jnp.isfinite(probs)))
    assert bool(jnp.all(probs >= 0.0))
    assert bool(jnp.all(jnp.abs(jnp.sum(probs, axis=-1) - 1.0) < 1e-4))  # exact output softmax
    print("KERNEL_OK")
</pallas_src>

<mosaic_0001>
module attributes {stable_mosaic.version = 11 : i64} {
  func.func @fused_transformer_kernel(%arg0: i32, %arg1: memref<8x1xi32, #tpu.memory_space<vmem>>, %arg2: memref<128x32xbf16, #tpu.memory_space<vmem>>, %arg3: memref<96x256xbf16, #tpu.memory_space<vmem>>, %arg4: memref<32x128xf32, #tpu.memory_space<vmem>>, %arg5: memref<8x128xf32, #tpu.memory_space<vmem>>) attributes {dimension_semantics = [#tpu.dimension_semantics<parallel>], iteration_bounds = array<i64: 2>, scalar_prefetch = 0 : i64, scratch_operands = 0 : i64, tpu.core_type = #tpu.core_type<tc>, window_params = [{transform_indices = @transform_0, window_bounds = array<i64: 8, 1>}, {pipeline_mode = #tpu.pipeline_mode<synchronous>, transform_indices = @transform_1, window_bounds = array<i64: 128, 32>}, {pipeline_mode = #tpu.pipeline_mode<synchronous>, transform_indices = @transform_2, window_bounds = array<i64: 96, 256>}, {pipeline_mode = #tpu.pipeline_mode<synchronous>, transform_indices = @transform_3, window_bounds = array<i64: 32, 128>}, {transform_indices = @transform_4, window_bounds = array<i64: 8, 128>}]} {
    %c0 = arith.constant 0 : index
    %c0_0 = arith.constant 0 : index
    %0 = vector.load %arg1[%c0, %c0_0] : memref<8x1xi32, #tpu.memory_space<vmem>>, vector<8x1xi32>
    %1 = tpu.iota {dimensions = array<i32: 1>} : vector<8x128xi32>
    %2 = vector.broadcast %0 : vector<8x1xi32> to vector<8x128xi32>
    %3 = arith.cmpi eq, %1, %2 : vector<8x128xi32>
    %4 = arith.extui %3 : vector<8x128xi1> to vector<8x128xi32>
    %5 = arith.sitofp %4 : vector<8x128xi32> to vector<8x128xf32>
    %6 = arith.truncf %5 : vector<8x128xf32> to vector<8x128xbf16>
    %c0_1 = arith.constant 0 : index
    %c0_2 = arith.constant 0 : index
    %7 = vector.load %arg2[%c0_1, %c0_2] : memref<128x32xbf16, #tpu.memory_space<vmem>>, vector<128x32xbf16>
    %cst = arith.constant dense<0.000000e+00> : vector<8x32xf32>
    %8 = tpu.matmul %6, %7, %cst {dimension_numbers = #tpu.dot_dimension_numbers<[1], [0], [0], [1], [0, 0, 1, 1], [], []>} : vector<8x128xbf16>, vector<128x32xbf16>, vector<8x32xf32> -> vector<8x32xf32>
    %cst_3 = arith.constant 5.65685415 : f32
    %9 = vector.broadcast %cst_3 : f32 to vector<8x32xf32>
    %10 = arith.mulf %8, %9 : vector<8x32xf32>
    %c24 = arith.constant 24 : index
    %c0_4 = arith.constant 0 : index
    %11 = vector.load %arg4[%c24, %c0_4] : memref<32x128xf32, #tpu.memory_space<vmem>>, vector<8x32xf32>
    %12 = arith.addf %10, %11 : vector<8x32xf32>
    %c0_5 = arith.constant 0 : index
    %c0_6 = arith.constant 0 : index
    %13 = vector.load %arg3[%c0_5, %c0_6] : memref<96x256xbf16, #tpu.memory_space<vmem>>, vector<32x96xbf16>
    %c0_7 = arith.constant 0 : index
    %c96 = arith.constant 96 : index
    %14 = vector.load %arg3[%c0_7, %c96] : memref<96x256xbf16, #tpu.memory_space<vmem>>, vector<32x32xbf16>
    %c0_8 = arith.constant 0 : index
    %c128 = arith.constant 128 : index
    %15 = vector.load %arg3[%c0_8, %c128] : memref<96x256xbf16, #tpu.memory_space<vmem>>, vector<32x64xbf16>
    %c0_9 = arith.constant 0 : index
    %c192 = arith.constant 192 : index
    %16 = vector.load %arg3[%c0_9, %c192] : memref<96x256xbf16, #tpu.memory_space<vmem>>, vector<32x64xbf16>
    %c0_10 = arith.constant 0 : index
    %c0_11 = arith.constant 0 : index
    %17 = vector.load %arg4[%c0_10, %c0_11] : memref<32x128xf32, #tpu.memory_space<vmem>>, vector<1x32xf32>
    %c1 = arith.constant 1 : index
    %c0_12 = arith.constant 0 : index
    %18 = vector.load %arg4[%c1, %c0_12] : memref<32x128xf32, #tpu.memory_space<vmem>>, vector<1x32xf32>
    %cst_13 = arith.constant dense<0.000000e+00> : vector<8xf32>
    %19 = vector.multi_reduction <add>, %12, %cst_13 [1] : vector<8x32xf32> to vector<8xf32>
    %20 = vector.shape_cast %19 : vector<8xf32> to vector<8x1xf32>
    %cst_14 = arith.constant 3.200000e+01 : f32
    %21 = vector.broadcast %cst_14 : f32 to vector<8x1xf32>
    %22 = arith.divf %20, %21 : vector<8x1xf32>
    %23 = vector.broadcast %22 : vector<8x1xf32> to vector<8x32xf32>
    %24 = arith.subf %12, %23 : vector<8x32xf32>
    %25 = arith.mulf %24, %24 : vector<8x32xf32>
    %cst_15 = arith.constant dense<0.000000e+00> : vector<8xf32>
    %26 = vector.multi_reduction <add>, %25, %cst_15 [1] : vector<8x32xf32> to vector<8xf32>
    %27 = vector.shape_cast %26 : vector<8xf32> to vector<8x1xf32>
    %cst_16 = arith.constant 3.100000e+01 : f32
    %28 = vector.broadcast %cst_16 : f32 to vector<8x1xf32>
    %29 = arith.divf %27, %28 : vector<8x1xf32>
    %30 = math.sqrt %29 : vector<8x1xf32>
    %31 = vector.broadcast %22 : vector<8x1xf32> to vector<8x32xf32>
    %32 = arith.subf %12, %31 : vector<8x32xf32>
    %33 = vector.broadcast %17 : vector<1x32xf32> to vector<8x32xf32>
    %34 = arith.mulf %33, %32 : vector<8x32xf32>
    %cst_17 = arith.constant 9.99999997E-7 : f32
    %35 = vector.broadcast %cst_17 : f32 to vector<8x1xf32>
    %36 = arith.addf %30, %35 : vector<8x1xf32>
    %37 = vector.broadcast %36 : vector<8x1xf32> to vector<8x32xf32>
    %38 = arith.divf %34, %37 : vector<8x32xf32>
    %39 = vector.broadcast %18 : vector<1x32xf32> to vector<8x32xf32>
    %40 = arith.addf %38, %39 : vector<8x32xf32>
    %41 = arith.truncf %40 : vector<8x32xf32> to vector<8x32xbf16>
    %cst_18 = arith.constant dense<0.000000e+00> : vector<8x96xf32>
    %42 = tpu.matmul %41, %13, %cst_18 {dimension_numbers = #tpu.dot_dimension_numbers<[1], [0], [0], [1], [0, 0, 1, 1], [], []>} : vector<8x32xbf16>, vector<32x96xbf16>, vector<8x96xf32> -> vector<8x96xf32>
    %c2 = arith.constant 2 : index
    %c0_19 = arith.constant 0 : index
    %43 = vector.load %arg4[%c2, %c0_19] : memref<32x128xf32, #tpu.memory_space<vmem>>, vector<1x96xf32>
    %44 = vector.broadcast %43 : vector<1x96xf32> to vector<8x96xf32>
    %45 = arith.addf %42, %44 : vector<8x96xf32>
    %cst_20 = arith.constant 0.000000e+00 : f32
    %46 = vector.broadcast %cst_20 : f32 to vector<8x32xf32>
    %47 = vector.extract_strided_slice %45 {offsets = [0, 0], sizes = [8, 8], strides = [1, 1]} : vector<8x96xf32> to vector<8x8xf32>
    %48 = arith.truncf %47 : vector<8x8xf32> to vector<8x8xbf16>
    %49 = vector.extract_strided_slice %45 {offsets = [0, 32], sizes = [8, 8], strides = [1, 1]} : vector<8x96xf32> to vector<8x8xf32>
    %50 = arith.truncf %49 : vector<8x8xf32> to vector<8x8xbf16>
    %51 = vector.extract_strided_slice %45 {offsets = [0, 64], sizes = [8, 8], strides = [1, 1]} : vector<8x96xf32> to vector<8x8xf32>
    %52 = arith.truncf %51 : vector<8x8xf32> to vector<8x8xbf16>
    %cst_21 = arith.constant dense<0.000000e+00> : vector<8x8xf32>
    %53 = tpu.matmul %48, %50, %cst_21 {dimension_numbers = #tpu.dot_dimension_numbers<[1], [1], [0], [0], [0, 0, 1, 0], [], []>} : vector<8x8xbf16>, vector<8x8xbf16>, vector<8x8xf32> -> vector<8x8xf32>
    %cst_22 = arith.constant dense<0xFF800000> : vector<8xf32>
    %54 = vector.multi_reduction <maximumf>, %53, %cst_22 [1] : vector<8x8xf32> to vector<8xf32>
    %55 = vector.shape_cast %54 : vector<8xf32> to vector<8x1xf32>
    %56 = vector.broadcast %55 : vector<8x1xf32> to vector<8x8xf32>
    %57 = arith.subf %53, %56 : vector<8x8xf32>
    %58 = math.exp %57 : vector<8x8xf32>
    %cst_23 = arith.constant dense<0.000000e+00> : vector<8xf32>
    %59 = vector.multi_reduction <add>, %58, %cst_23 [1] : vector<8x8xf32> to vector<8xf32>
    %60 = vector.shape_cast %59 : vector<8xf32> to vector<8x1xf32>
    %61 = tpu.reciprocal %60 {approx = true} : vector<8x1xf32> -> vector<8x1xf32>
    %62 = vector.broadcast %61 : vector<8x1xf32> to vector<8x8xf32>
    %63 = arith.mulf %58, %62 : vector<8x8xf32>
    %64 = arith.truncf %63 : vector<8x8xf32> to vector<8x8xbf16>
    %cst_24 = arith.constant dense<0.000000e+00> : vector<8x8xf32>
    %65 = tpu.matmul %64, %52, %cst_24 {dimension_numbers = #tpu.dot_dimension_numbers<[1], [0], [0], [1], [0, 0, 1, 1], [], []>} : vector<8x8xbf16>, vector<8x8xbf16>, vector<8x8xf32> -> vector<8x8xf32>
    %66 = arith.truncf %65 : vector<8x8xf32> to vector<8x8xbf16>
    %67 = vector.extract_strided_slice %14 {offsets = [0, 0], sizes = [32, 8], strides = [1, 1]} : vector<32x32xbf16> to vector<32x8xbf16>
    %cst_25 = arith.constant dense<0.000000e+00> : vector<8x32xf32>
    %68 = tpu.matmul %66, %67, %cst_25 {dimension_numbers = #tpu.dot_dimension_numbers<[1], [1], [0], [0], [0, 0, 1, 0], [], []>} : vector<8x8xbf16>, vector<32x8xbf16>, vector<8x32xf32> -> vector<8x32xf32>
    %69 = arith.addf %46, %68 : vector<8x32xf32>
    %70 = vector.extract_strided_slice %45 {offsets = [0, 8], sizes = [8, 8], strides = [1, 1]} : vector<8x96xf32> to vector<8x8xf32>
    %71 = arith.truncf %70 : vector<8x8xf32> to vector<8x8xbf16>
    %72 = vector.extract_strided_slice %45 {offsets = [0, 40], sizes = [8, 8], strides = [1, 1]} : vector<8x96xf32> to vector<8x8xf32>
    %73 = arith.truncf %72 : vector<8x8xf32> to vector<8x8xbf16>
    %74 = vector.extract_strided_slice %45 {offsets = [0, 72], sizes = [8, 8], strides = [1, 1]} : vector<8x96xf32> to vector<8x8xf32>
    %75 = arith.truncf %74 : vector<8x8xf32> to vector<8x8xbf16>
    %cst_26 = arith.constant dense<0.000000e+00> : vector<8x8xf32>
    %76 = tpu.matmul %71, %73, %cst_26 {dimension_numbers = #tpu.dot_dimension_numbers<[1], [1], [0], [0], [0, 0, 1, 0], [], []>} : vector<8x8xbf16>, vector<8x8xbf16>, vector<8x8xf32> -> vector<8x8xf32>
    %cst_27 = arith.constant dense<0xFF800000> : vector<8xf32>
    %77 = vector.multi_reduction <maximumf>, %76, %cst_27 [1] : vector<8x8xf32> to vector<8xf32>
    %78 = vector.shape_cast %77 : vector<8xf32> to vector<8x1xf32>
    %79 = vector.broadcast %78 : vector<8x1xf32> to vector<8x8xf32>
    %80 = arith.subf %76, %79 : vector<8x8xf32>
    %81 = math.exp %80 : vector<8x8xf32>
    %cst_28 = arith.constant dense<0.000000e+00> : vector<8xf32>
    %82 = vector.multi_reduction <add>, %81, %cst_28 [1] : vector<8x8xf32> to vector<8xf32>
    %83 = vector.shape_cast %82 : vector<8xf32> to vector<8x1xf32>
    %84 = tpu.reciprocal %83 {approx = true} : vector<8x1xf32> -> vector<8x1xf32>
    %85 = vector.broadcast %84 : vector<8x1xf32> to vector<8x8xf32>
    %86 = arith.mulf %81, %85 : vector<8x8xf32>
    %87 = arith.truncf %86 : vector<8x8xf32> to vector<8x8xbf16>
    %cst_29 = arith.constant dense<0.000000e+00> : vector<8x8xf32>
    %88 = tpu.matmul %87, %75, %cst_29 {dimension_numbers = #tpu.dot_dimension_numbers<[1], [0], [0], [1], [0, 0, 1, 1], [], []>} : vector<8x8xbf16>, vector<8x8xbf16>, vector<8x8xf32> -> vector<8x8xf32>
    %89 = arith.truncf %88 : vector<8x8xf32> to vector<8x8xbf16>
    %90 = vector.extract_strided_slice %14 {offsets = [0, 8], sizes = [32, 8], strides = [1, 1]} : vector<32x32xbf16> to vector<32x8xbf16>
    %cst_30 = arith.constant dense<0.000000e+00> : vector<8x32xf32>
    %91 = tpu.matmul %89, %90, %cst_30 {dimension_numbers = #tpu.dot_dimension_numbers<[1], [1], [0], [0], [0, 0, 1, 0], [], []>} : vector<8x8xbf16>, vector<32x8xbf16>, vector<8x32xf32> -> vector<8x32xf32>
    %92 = arith.addf %69, %91 : vector<8x32xf32>
    %93 = vector.extract_strided_slice %45 {offsets = [0, 16], sizes = [8, 8], strides = [1, 1]} : vector<8x96xf32> to vector<8x8xf32>
    %94 = arith.truncf %93 : vector<8x8xf32> to vector<8x8xbf16>
    %95 = vector.extract_strided_slice %45 {offsets = [0, 48], sizes = [8, 8], strides = [1, 1]} : vector<8x96xf32> to vector<8x8xf32>
    %96 = arith.truncf %95 : vector<8x8xf32> to vector<8x8xbf16>
    %97 = vector.extract_strided_slice %45 {offsets = [0, 80], sizes = [8, 8], strides = [1, 1]} : vector<8x96xf32> to vector<8x8xf32>
    %98 = arith.truncf %97 : vector<8x8xf32> to vector<8x8xbf16>
    %cst_31 = arith.constant dense<0.000000e+00> : vector<8x8xf32>
    %99 = tpu.matmul %94, %96, %cst_31 {dimension_numbers = #tpu.dot_dimension_numbers<[1], [1], [0], [0], [0, 0, 1, 0], [], []>} : vector<8x8xbf16>, vector<8x8xbf16>, vector<8x8xf32> -> vector<8x8xf32>
    %cst_32 = arith.constant dense<0xFF800000> : vector<8xf32>
    %100 = vector.multi_reduction <maximumf>, %99, %cst_32 [1] : vector<8x8xf32> to vector<8xf32>
    %101 = vector.shape_cast %100 : vector<8xf32> to vector<8x1xf32>
    %102 = vector.broadcast %101 : vector<8x1xf32> to vector<8x8xf32>
    %103 = arith.subf %99, %102 : vector<8x8xf32>
    %104 = math.exp %103 : vector<8x8xf32>
    %cst_33 = arith.constant dense<0.000000e+00> : vector<8xf32>
    %105 = vector.multi_reduction <add>, %104, %cst_33 [1] : vector<8x8xf32> to vector<8xf32>
    %106 = vector.shape_cast %105 : vector<8xf32> to vector<8x1xf32>
    %107 = tpu.reciprocal %106 {approx = true} : vector<8x1xf32> -> vector<8x1xf32>
    %108 = vector.broadcast %107 : vector<8x1xf32> to vector<8x8xf32>
    %109 = arith.mulf %104, %108 : vector<8x8xf32>
    %110 = arith.truncf %109 : vector<8x8xf32> to vector<8x8xbf16>
    %cst_34 = arith.constant dense<0.000000e+00> : vector<8x8xf32>
    %111 = tpu.matmul %110, %98, %cst_34 {dimension_numbers = #tpu.dot_dimension_numbers<[1], [0], [0], [1], [0, 0, 1, 1], [], []>} : vector<8x8xbf16>, vector<8x8xbf16>, vector<8x8xf32> -> vector<8x8xf32>
    %112 = arith.truncf %111 : vector<8x8xf32> to vector<8x8xbf16>
    %113 = vector.extract_strided_slice %14 {offsets = [0, 16], sizes = [32, 8], strides = [1, 1]} : vector<32x32xbf16> to vector<32x8xbf16>
    %cst_35 = arith.constant dense<0.000000e+00> : vector<8x32xf32>
    %114 = tpu.matmul %112, %113, %cst_35 {dimension_numbers = #tpu.dot_dimension_numbers<[1], [1], [0], [0], [0, 0, 1, 0], [], []>} : vector<8x8xbf16>, vector<32x8xbf16>, vector<8x32xf32> -> vector<8x32xf32>
    %115 = arith.addf %92, %114 : vector<8x32xf32>
    %116 = vector.extract_strided_slice %45 {offsets = [0, 24], sizes = [8, 8], strides = [1, 1]} : vector<8x96xf32> to vector<8x8xf32>
    %117 = arith.truncf %116 : vector<8x8xf32> to vector<8x8xbf16>
    %118 = vector.extract_strided_slice %45 {offsets = [0, 56], sizes = [8, 8], strides = [1, 1]} : vector<8x96xf32> to vector<8x8xf32>
    %119 = arith.truncf %118 : vector<8x8xf32> to vector<8x8xbf16>
    %120 = vector.extract_strided_slice %45 {offsets = [0, 88], sizes = [8, 8], strides = [1, 1]} : vector<8x96xf32> to vector<8x8xf32>
    %121 = arith.truncf %120 : vector<8x8xf32> to vector<8x8xbf16>
    %cst_36 = arith.constant dense<0.000000e+00> : vector<8x8xf32>
    %122 = tpu.matmul %117, %119, %cst_36 {dimension_numbers = #tpu.dot_dimension_numbers<[1], [1], [0], [0], [0, 0, 1, 0], [], []>} : vector<8x8xbf16>, vector<8x8xbf16>, vector<8x8xf32> -> vector<8x8xf32>
    %cst_37 = arith.constant dense<0xFF800000> : vector<8xf32>
    %123 = vector.multi_reduction <maximumf>, %122, %cst_37 [1] : vector<8x8xf32> to vector<8xf32>
    %124 = vector.shape_cast %123 : vector<8xf32> to vector<8x1xf32>
    %125 = vector.broadcast %124 : vector<8x1xf32> to vector<8x8xf32>
    %126 = arith.subf %122, %125 : vector<8x8xf32>
    %127 = math.exp %126 : vector<8x8xf32>
    %cst_38 = arith.constant dense<0.000000e+00> : vector<8xf32>
    %128 = vector.multi_reduction <add>, %127, %cst_38 [1] : vector<8x8xf32> to vector<8xf32>
    %129 = vector.shape_cast %128 : vector<8xf32> to vector<8x1xf32>
    %130 = tpu.reciprocal %129 {approx = true} : vector<8x1xf32> -> vector<8x1xf32>
    %131 = vector.broadcast %130 : vector<8x1xf32> to vector<8x8xf32>
    %132 = arith.mulf %127, %131 : vector<8x8xf32>
    %133 = arith.truncf %132 : vector<8x8xf32> to vector<8x8xbf16>
    %cst_39 = arith.constant dense<0.000000e+00> : vector<8x8xf32>
    %134 = tpu.matmul %133, %121, %cst_39 {dimension_numbers = #tpu.dot_dimension_numbers<[1], [0], [0], [1], [0, 0, 1, 1], [], []>} : vector<8x8xbf16>, vector<8x8xbf16>, vector<8x8xf32> -> vector<8x8xf32>
    %135 = arith.truncf %134 : vector<8x8xf32> to vector<8x8xbf16>
    %136 = vector.extract_strided_slice %14 {offsets = [0, 24], sizes = [32, 8], strides = [1, 1]} : vector<32x32xbf16> to vector<32x8xbf16>
    %cst_40 = arith.constant dense<0.000000e+00> : vector<8x32xf32>
    %137 = tpu.matmul %135, %136, %cst_40 {dimension_numbers = #tpu.dot_dimension_numbers<[1], [1], [0], [0], [0, 0, 1, 0], [], []>} : vector<8x8xbf16>, vector<32x8xbf16>, vector<8x32xf32> -> vector<8x32xf32>
    %138 = arith.addf %115, %137 : vector<8x32xf32>
    %139 = arith.addf %12, %138 : vector<8x32xf32>
    %c3 = arith.constant 3 : index
    %c0_41 = arith.constant 0 : index
    %140 = vector.load %arg4[%c3, %c0_41] : memref<32x128xf32, #tpu.memory_space<vmem>>, vector<1x32xf32>
    %141 = vector.broadcast %140 : vector<1x32xf32> to vector<8x32xf32>
    %142 = arith.addf %139, %141 : vector<8x32xf32>
    %c4 = arith.constant 4 : index
    %c0_42 = arith.constant 0 : index
    %143 = vector.load %arg4[%c4, %c0_42] : memref<32x128xf32, #tpu.memory_space<vmem>>, vector<1x32xf32>
    %c5 = arith.constant 5 : index
    %c0_43 = arith.constant 0 : index
    %144 = vector.load %arg4[%c5, %c0_43] : memref<32x128xf32, #tpu.memory_space<vmem>>, vector<1x32xf32>
    %cst_44 = arith.constant dense<0.000000e+00> : vector<8xf32>
    %145 = vector.multi_reduction <add>, %142, %cst_44 [1] : vector<8x32xf32> to vector<8xf32>
    %146 = vector.shape_cast %145 : vector<8xf32> to vector<8x1xf32>
    %cst_45 = arith.constant 3.200000e+01 : f32
    %147 = vector.broadcast %cst_45 : f32 to vector<8x1xf32>
    %148 = arith.divf %146, %147 : vector<8x1xf32>
    %149 = vector.broadcast %148 : vector<8x1xf32> to vector<8x32xf32>
    %150 = arith.subf %142, %149 : vector<8x32xf32>
    %151 = arith.mulf %150, %150 : vector<8x32xf32>
    %cst_46 = arith.constant dense<0.000000e+00> : vector<8xf32>
    %152 = vector.multi_reduction <add>, %151, %cst_46 [1] : vector<8x32xf32> to vector<8xf32>
    %153 = vector.shape_cast %152 : vector<8xf32> to vector<8x1xf32>
    %cst_47 = arith.constant 3.100000e+01 : f32
    %154 = vector.broadcast %cst_47 : f32 to vector<8x1xf32>
    %155 = arith.divf %153, %154 : vector<8x1xf32>
    %156 = math.sqrt %155 : vector<8x1xf32>
    %157 = vector.broadcast %148 : vector<8x1xf32> to vector<8x32xf32>
    %158 = arith.subf %142, %157 : vector<8x32xf32>
    %159 = vector.broadcast %143 : vector<1x32xf32> to vector<8x32xf32>
    %160 = arith.mulf %159, %158 : vector<8x32xf32>
    %cst_48 = arith.constant 9.99999997E-7 : f32
    %161 = vector.broadcast %cst_48 : f32 to vector<8x1xf32>
    %162 = arith.addf %156, %161 : vector<8x1xf32>
    %163 = vector.broadcast %162 : vector<8x1xf32> to vector<8x32xf32>
    %164 = arith.divf %160, %163 : vector<8x32xf32>
    %165 = vector.broadcast %144 : vector<1x32xf32> to vector<8x32xf32>
    %166 = arith.addf %164, %165 : vector<8x32xf32>
    %167 = arith.truncf %166 : vector<8x32xf32> to vector<8x32xbf16>
    %cst_49 = arith.constant dense<0.000000e+00> : vector<8x64xf32>
    %168 = tpu.matmul %167, %15, %cst_49 {dimension_numbers = #tpu.dot_dimension_numbers<[1], [0], [0], [1], [0, 0, 1, 1], [], []>} : vector<8x32xbf16>, vector<32x64xbf16>, vector<8x64xf32> -> vector<8x64xf32>
    %c6 = arith.constant 6 : index
    %c0_50 = arith.constant 0 : index
    %169 = vector.load %arg4[%c6, %c0_50] : memref<32x128xf32, #tpu.memory_space<vmem>>, vector<1x64xf32>
    %170 = vector.broadcast %169 : vector<1x64xf32> to vector<8x64xf32>
    %171 = arith.addf %168, %170 : vector<8x64xf32>
    %cst_51 = arith.constant 0.000000e+00 : f32
    %172 = vector.broadcast %cst_51 : f32 to vector<8x64xf32>
    %173 = arith.maximumf %171, %172 : vector<8x64xf32>
    %174 = arith.truncf %173 : vector<8x64xf32> to vector<8x64xbf16>
    %cst_52 = arith.constant dense<0.000000e+00> : vector<8x32xf32>
    %175 = tpu.matmul %174, %16, %cst_52 {dimension_numbers = #tpu.dot_dimension_numbers<[1], [1], [0], [0], [0, 0, 1, 0], [], []>} : vector<8x64xbf16>, vector<32x64xbf16>, vector<8x32xf32> -> vector<8x32xf32>
    %c7 = arith.constant 7 : index
    %c0_53 = arith.constant 0 : index
    %176 = vector.load %arg4[%c7, %c0_53] : memref<32x128xf32, #tpu.memory_space<vmem>>, vector<1x32xf32>
    %177 = vector.broadcast %176 : vector<1x32xf32> to vector<8x32xf32>
    %178 = arith.addf %175, %177 : vector<8x32xf32>
    %179 = arith.addf %142, %178 : vector<8x32xf32>
    %c32 = arith.constant 32 : index
    %c0_54 = arith.constant 0 : index
    %180 = vector.load %arg3[%c32, %c0_54] : memref<96x256xbf16, #tpu.memory_space<vmem>>, vector<32x96xbf16>
    %c32_55 = arith.constant 32 : index
    %c96_56 = arith.constant 96 : index
    %181 = vector.load %arg3[%c32_55, %c96_56] : memref<96x256xbf16, #tpu.memory_space<vmem>>, vector<32x32xbf16>
    %c32_57 = arith.constant 32 : index
    %c128_58 = arith.constant 128 : index
    %182 = vector.load %arg3[%c32_57, %c128_58] : memref<96x256xbf16, #tpu.memory_space<vmem>>, vector<32x64xbf16>
    %c32_59 = arith.constant 32 : index
    %c192_60 = arith.constant 192 : index
    %183 = vector.load %arg3[%c32_59, %c192_60] : memref<96x256xbf16, #tpu.memory_space<vmem>>, vector<32x64xbf16>
    %c8 = arith.constant 8 : index
    %c0_61 = arith.constant 0 : index
    %184 = vector.load %arg4[%c8, %c0_61] : memref<32x128xf32, #tpu.memory_space<vmem>>, vector<1x32xf32>
    %c9 = arith.constant 9 : index
    %c0_62 = arith.constant 0 : index
    %185 = vector.load %arg4[%c9, %c0_62] : memref<32x128xf32, #tpu.memory_space<vmem>>, vector<1x32xf32>
    %cst_63 = arith.constant dense<0.000000e+00> : vector<8xf32>
    %186 = vector.multi_reduction <add>, %179, %cst_63 [1] : vector<8x32xf32> to vector<8xf32>
    %187 = vector.shape_cast %186 : vector<8xf32> to vector<8x1xf32>
    %cst_64 = arith.constant 3.200000e+01 : f32
    %188 = vector.broadcast %cst_64 : f32 to vector<8x1xf32>
    %189 = arith.divf %187, %188 : vector<8x1xf32>
    %190 = vector.broadcast %189 : vector<8x1xf32> to vector<8x32xf32>
    %191 = arith.subf %179, %190 : vector<8x32xf32>
    %192 = arith.mulf %191, %191 : vector<8x32xf32>
    %cst_65 = arith.constant dense<0.000000e+00> : vector<8xf32>
    %193 = vector.multi_reduction <add>, %192, %cst_65 [1] : vector<8x32xf32> to vector<8xf32>
    %194 = vector.shape_cast %193 : vector<8xf32> to vector<8x1xf32>
    %cst_66 = arith.constant 3.100000e+01 : f32
    %195 = vector.broadcast %cst_66 : f32 to vector<8x1xf32>
    %196 = arith.divf %194, %195 : vector<8x1xf32>
    %197 = math.sqrt %196 : vector<8x1xf32>
    %198 = vector.broadcast %189 : vector<8x1xf32> to vector<8x32xf32>
    %199 = arith.subf %179, %198 : vector<8x32xf32>
    %200 = vector.broadcast %184 : vector<1x32xf32> to vector<8x32xf32>
    %201 = arith.mulf %200, %199 : vector<8x32xf32>
    %cst_67 = arith.constant 9.99999997E-7 : f32
    %202 = vector.broadcast %cst_67 : f32 to vector<8x1xf32>
    %203 = arith.addf %197, %202 : vector<8x1xf32>
    %204 = vector.broadcast %203 : vector<8x1xf32> to vector<8x32xf32>
    %205 = arith.divf %201, %204 : vector<8x32xf32>
    %206 = vector.broadcast %185 : vector<1x32xf32> to vector<8x32xf32>
    %207 = arith.addf %205, %206 : vector<8x32xf32>
    %208 = arith.truncf %207 : vector<8x32xf32> to vector<8x32xbf16>
    %cst_68 = arith.constant dense<0.000000e+00> : vector<8x96xf32>
    %209 = tpu.matmul %208, %180, %cst_68 {dimension_numbers = #tpu.dot_dimension_numbers<[1], [0], [0], [1], [0, 0, 1, 1], [], []>} : vector<8x32xbf16>, vector<32x96xbf16>, vector<8x96xf32> -> vector<8x96xf32>
    %c10 = arith.constant 10 : index
    %c0_69 = arith.constant 0 : index
    %210 = vector.load %arg4[%c10, %c0_69] : memref<32x128xf32, #tpu.memory_space<vmem>>, vector<1x96xf32>
    %211 = vector.broadcast %210 : vector<1x96xf32> to vector<8x96xf32>
    %212 = arith.addf %209, %211 : vector<8x96xf32>
    %cst_70 = arith.constant 0.000000e+00 : f32
    %213 = vector.broadcast %cst_70 : f32 to vector<8x32xf32>
    %214 = vector.extract_strided_slice %212 {offsets = [0, 0], sizes = [8, 8], strides = [1, 1]} : vector<8x96xf32> to vector<8x8xf32>
    %215 = arith.truncf %214 : vector<8x8xf32> to vector<8x8xbf16>
    %216 = vector.extract_strided_slice %212 {offsets = [0, 32], sizes = [8, 8], strides = [1, 1]} : vector<8x96xf32> to vector<8x8xf32>
    %217 = arith.truncf %216 : vector<8x8xf32> to vector<8x8xbf16>
    %218 = vector.extract_strided_slice %212 {offsets = [0, 64], sizes = [8, 8], strides = [1, 1]} : vector<8x96xf32> to vector<8x8xf32>
    %219 = arith.truncf %218 : vector<8x8xf32> to vector<8x8xbf16>
    %cst_71 = arith.constant dense<0.000000e+00> : vector<8x8xf32>
    %220 = tpu.matmul %215, %217, %cst_71 {dimension_numbers = #tpu.dot_dimension_numbers<[1], [1], [0], [0], [0, 0, 1, 0], [], []>} : vector<8x8xbf16>, vector<8x8xbf16>, vector<8x8xf32> -> vector<8x8xf32>
    %cst_72 = arith.constant dense<0xFF800000> : vector<8xf32>
    %221 = vector.multi_reduction <maximumf>, %220, %cst_72 [1] : vector<8x8xf32> to vector<8xf32>
    %222 = vector.shape_cast %221 : vector<8xf32> to vector<8x1xf32>
    %223 = vector.broadcast %222 : vector<8x1xf32> to vector<8x8xf32>
    %224 = arith.subf %220, %223 : vector<8x8xf32>
    %225 = math.exp %224 : vector<8x8xf32>
    %cst_73 = arith.constant dense<0.000000e+00> : vector<8xf32>
    %226 = vector.multi_reduction <add>, %225, %cst_73 [1] : vector<8x8xf32> to vector<8xf32>
    %227 = vector.shape_cast %226 : vector<8xf32> to vector<8x1xf32>
    %228 = tpu.reciprocal %227 {approx = true} : vector<8x1xf32> -> vector<8x1xf32>
    %229 = vector.broadcast %228 : vector<8x1xf32> to vector<8x8xf32>
    %230 = arith.mulf %225, %229 : vector<8x8xf32>
    %231 = arith.truncf %230 : vector<8x8xf32> to vector<8x8xbf16>
    %cst_74 = arith.constant dense<0.000000e+00> : vector<8x8xf32>
    %232 = tpu.matmul %231, %219, %cst_74 {dimension_numbers = #tpu.dot_dimension_numbers<[1], [0], [0], [1], [0, 0, 1, 1], [], []>} : vector<8x8xbf16>, vector<8x8xbf16>, vector<8x8xf32> -> vector<8x8xf32>
    %233 = arith.truncf %232 : vector<8x8xf32> to vector<8x8xbf16>
    %234 = vector.extract_strided_slice %181 {offsets = [0, 0], sizes = [32, 8], strides = [1, 1]} : vector<32x32xbf16> to vector<32x8xbf16>
    %cst_75 = arith.constant dense<0.000000e+00> : vector<8x32xf32>
    %235 = tpu.matmul %233, %234, %cst_75 {dimension_numbers = #tpu.dot_dimension_numbers<[1], [1], [0], [0], [0, 0, 1, 0], [], []>} : vector<8x8xbf16>, vector<32x8xbf16>, vector<8x32xf32> -> vector<8x32xf32>
    %236 = arith.addf %213, %235 : vector<8x32xf32>
    %237 = vector.extract_strided_slice %212 {offsets = [0, 8], sizes = [8, 8], strides = [1, 1]} : vector<8x96xf32> to vector<8x8xf32>
    %238 = arith.truncf %237 : vector<8x8xf32> to vector<8x8xbf16>
    %239 = vector.extract_strided_slice %212 {offsets = [0, 40], sizes = [8, 8], strides = [1, 1]} : vector<8x96xf32> to vector<8x8xf32>
    %240 = arith.truncf %239 : vector<8x8xf32> to vector<8x8xbf16>
    %241 = vector.extract_strided_slice %212 {offsets = [0, 72], sizes = [8, 8], strides = [1, 1]} : vector<8x96xf32> to vector<8x8xf32>
    %242 = arith.truncf %241 : vector<8x8xf32> to vector<8x8xbf16>
    %cst_76 = arith.constant dense<0.000000e+00> : vector<8x8xf32>
    %243 = tpu.matmul %238, %240, %cst_76 {dimension_numbers = #tpu.dot_dimension_numbers<[1], [1], [0], [0], [0, 0, 1, 0], [], []>} : vector<8x8xbf16>, vector<8x8xbf16>, vector<8x8xf32> -> vector<8x8xf32>
    %cst_77 = arith.constant dense<0xFF800000> : vector<8xf32>
    %244 = vector.multi_reduction <maximumf>, %243, %cst_77 [1] : vector<8x8xf32> to vector<8xf32>
    %245 = vector.shape_cast %244 : vector<8xf32> to vector<8x1xf32>
    %246 = vector.broadcast %245 : vector<8x1xf32> to vector<8x8xf32>
    %247 = arith.subf %243, %246 : vector<8x8xf32>
    %248 = math.exp %247 : vector<8x8xf32>
    %cst_78 = arith.constant dense<0.000000e+00> : vector<8xf32>
    %249 = vector.multi_reduction <add>, %248, %cst_78 [1] : vector<8x8xf32> to vector<8xf32>
    %250 = vector.shape_cast %249 : vector<8xf32> to vector<8x1xf32>
    %251 = tpu.reciprocal %250 {approx = true} : vector<8x1xf32> -> vector<8x1xf32>
    %252 = vector.broadcast %251 : vector<8x1xf32> to vector<8x8xf32>
    %253 = arith.mulf %248, %252 : vector<8x8xf32>
    %254 = arith.truncf %253 : vector<8x8xf32> to vector<8x8xbf16>
    %cst_79 = arith.constant dense<0.000000e+00> : vector<8x8xf32>
    %255 = tpu.matmul %254, %242, %cst_79 {dimension_numbers = #tpu.dot_dimension_numbers<[1], [0], [0], [1], [0, 0, 1, 1], [], []>} : vector<8x8xbf16>, vector<8x8xbf16>, vector<8x8xf32> -> vector<8x8xf32>
    %256 = arith.truncf %255 : vector<8x8xf32> to vector<8x8xbf16>
    %257 = vector.extract_strided_slice %181 {offsets = [0, 8], sizes = [32, 8], strides = [1, 1]} : vector<32x32xbf16> to vector<32x8xbf16>
    %cst_80 = arith.constant dense<0.000000e+00> : vector<8x32xf32>
    %258 = tpu.matmul %256, %257, %cst_80 {dimension_numbers = #tpu.dot_dimension_numbers<[1], [1], [0], [0], [0, 0, 1, 0], [], []>} : vector<8x8xbf16>, vector<32x8xbf16>, vector<8x32xf32> -> vector<8x32xf32>
    %259 = arith.addf %236, %258 : vector<8x32xf32>
    %260 = vector.extract_strided_slice %212 {offsets = [0, 16], sizes = [8, 8], strides = [1, 1]} : vector<8x96xf32> to vector<8x8xf32>
    %261 = arith.truncf %260 : vector<8x8xf32> to vector<8x8xbf16>
    %262 = vector.extract_strided_slice %212 {offsets = [0, 48], sizes = [8, 8], strides = [1, 1]} : vector<8x96xf32> to vector<8x8xf32>
    %263 = arith.truncf %262 : vector<8x8xf32> to vector<8x8xbf16>
    %264 = vector.extract_strided_slice %212 {offsets = [0, 80], sizes = [8, 8], strides = [1, 1]} : vector<8x96xf32> to vector<8x8xf32>
    %265 = arith.truncf %264 : vector<8x8xf32> to vector<8x8xbf16>
    %cst_81 = arith.constant dense<0.000000e+00> : vector<8x8xf32>
    %266 = tpu.matmul %261, %263, %cst_81 {dimension_numbers = #tpu.dot_dimension_numbers<[1], [1], [0], [0], [0, 0, 1, 0], [], []>} : vector<8x8xbf16>, vector<8x8xbf16>, vector<8x8xf32> -> vector<8x8xf32>
    %cst_82 = arith.constant dense<0xFF800000> : vector<8xf32>
    %267 = vector.multi_reduction <maximumf>, %266, %cst_82 [1] : vector<8x8xf32> to vector<8xf32>
    %268 = vector.shape_cast %267 : vector<8xf32> to vector<8x1xf32>
    %269 = vector.broadcast %268 : vector<8x1xf32> to vector<8x8xf32>
    %270 = arith.subf %266, %269 : vector<8x8xf32>
    %271 = math.exp %270 : vector<8x8xf32>
    %cst_83 = arith.constant dense<0.000000e+00> : vector<8xf32>
    %272 = vector.multi_reduction <add>, %271, %cst_83 [1] : vector<8x8xf32> to vector<8xf32>
    %273 = vector.shape_cast %272 : vector<8xf32> to vector<8x1xf32>
    %274 = tpu.reciprocal %273 {approx = true} : vector<8x1xf32> -> vector<8x1xf32>
    %275 = vector.broadcast %274 : vector<8x1xf32> to vector<8x8xf32>
    %276 = arith.mulf %271, %275 : vector<8x8xf32>
    %277 = arith.truncf %276 : vector<8x8xf32> to vector<8x8xbf16>
    %cst_84 = arith.constant dense<0.000000e+00> : vector<8x8xf32>
    %278 = tpu.matmul %277, %265, %cst_84 {dimension_numbers = #tpu.dot_dimension_numbers<[1], [0], [0], [1], [0, 0, 1, 1], [], []>} : vector<8x8xbf16>, vector<8x8xbf16>, vector<8x8xf32> -> vector<8x8xf32>
    %279 = arith.truncf %278 : vector<8x8xf32> to vector<8x8xbf16>
    %280 = vector.extract_strided_slice %181 {offsets = [0, 16], sizes = [32, 8], strides = [1, 1]} : vector<32x32xbf16> to vector<32x8xbf16>
    %cst_85 = arith.constant dense<0.000000e+00> : vector<8x32xf32>
    %281 = tpu.matmul %279, %280, %cst_85 {dimension_numbers = #tpu.dot_dimension_numbers<[1], [1], [0], [0], [0, 0, 1, 0], [], []>} : vector<8x8xbf16>, vector<32x8xbf16>, vector<8x32xf32> -> vector<8x32xf32>
    %282 = arith.addf %259, %281 : vector<8x32xf32>
    %283 = vector.extract_strided_slice %212 {offsets = [0, 24], sizes = [8, 8], strides = [1, 1]} : vector<8x96xf32> to vector<8x8xf32>
    %284 = arith.truncf %283 : vector<8x8xf32> to vector<8x8xbf16>
    %285 = vector.extract_strided_slice %212 {offsets = [0, 56], sizes = [8, 8], strides = [1, 1]} : vector<8x96xf32> to vector<8x8xf32>
    %286 = arith.truncf %285 : vector<8x8xf32> to vector<8x8xbf16>
    %287 = vector.extract_strided_slice %212 {offsets = [0, 88], sizes = [8, 8], strides = [1, 1]} : vector<8x96xf32> to vector<8x8xf32>
    %288 = arith.truncf %287 : vector<8x8xf32> to vector<8x8xbf16>
    %cst_86 = arith.constant dense<0.000000e+00> : vector<8x8xf32>
    %289 = tpu.matmul %284, %286, %cst_86 {dimension_numbers = #tpu.dot_dimension_numbers<[1], [1], [0], [0], [0, 0, 1, 0], [], []>} : vector<8x8xbf16>, vector<8x8xbf16>, vector<8x8xf32> -> vector<8x8xf32>
    %cst_87 = arith.constant dense<0xFF800000> : vector<8xf32>
    %290 = vector.multi_reduction <maximumf>, %289, %cst_87 [1] : vector<8x8xf32> to vector<8xf32>
    %291 = vector.shape_cast %290 : vector<8xf32> to vector<8x1xf32>
    %292 = vector.broadcast %291 : vector<8x1xf32> to vector<8x8xf32>
    %293 = arith.subf %289, %292 : vector<8x8xf32>
    %294 = math.exp %293 : vector<8x8xf32>
    %cst_88 = arith.constant dense<0.000000e+00> : vector<8xf32>
    %295 = vector.multi_reduction <add>, %294, %cst_88 [1] : vector<8x8xf32> to vector<8xf32>
    %296 = vector.shape_cast %295 : vector<8xf32> to vector<8x1xf32>
    %297 = tpu.reciprocal %296 {approx = true} : vector<8x1xf32> -> vector<8x1xf32>
    %298 = vector.broadcast %297 : vector<8x1xf32> to vector<8x8xf32>
    %299 = arith.mulf %294, %298 : vector<8x8xf32>
    %300 = arith.truncf %299 : vector<8x8xf32> to vector<8x8xbf16>
    %cst_89 = arith.constant dense<0.000000e+00> : vector<8x8xf32>
    %301 = tpu.matmul %300, %288, %cst_89 {dimension_numbers = #tpu.dot_dimension_numbers<[1], [0], [0], [1], [0, 0, 1, 1], [], []>} : vector<8x8xbf16>, vector<8x8xbf16>, vector<8x8xf32> -> vector<8x8xf32>
    %302 = arith.truncf %301 : vector<8x8xf32> to vector<8x8xbf16>
    %303 = vector.extract_strided_slice %181 {offsets = [0, 24], sizes = [32, 8], strides = [1, 1]} : vector<32x32xbf16> to vector<32x8xbf16>
    %cst_90 = arith.constant dense<0.000000e+00> : vector<8x32xf32>
    %304 = tpu.matmul %302, %303, %cst_90 {dimension_numbers = #tpu.dot_dimension_numbers<[1], [1], [0], [0], [0, 0, 1, 0], [], []>} : vector<8x8xbf16>, vector<32x8xbf16>, vector<8x32xf32> -> vector<8x32xf32>
    %305 = arith.addf %282, %304 : vector<8x32xf32>
    %306 = arith.addf %179, %305 : vector<8x32xf32>
    %c11 = arith.constant 11 : index
    %c0_91 = arith.constant 0 : index
    %307 = vector.load %arg4[%c11, %c0_91] : memref<32x128xf32, #tpu.memory_space<vmem>>, vector<1x32xf32>
    %308 = vector.broadcast %307 : vector<1x32xf32> to vector<8x32xf32>
    %309 = arith.addf %306, %308 : vector<8x32xf32>
    %c12 = arith.constant 12 : index
    %c0_92 = arith.constant 0 : index
    %310 = vector.load %arg4[%c12, %c0_92] : memref<32x128xf32, #tpu.memory_space<vmem>>, vector<1x32xf32>
    %c13 = arith.constant 13 : index
    %c0_93 = arith.constant 0 : index
    %311 = vector.load %arg4[%c13, %c0_93] : memref<32x128xf32, #tpu.memory_space<vmem>>, vector<1x32xf32>
    %cst_94 = arith.constant dense<0.000000e+00> : vector<8xf32>
    %312 = vector.multi_reduction <add>, %309, %cst_94 [1] : vector<8x32xf32> to vector<8xf32>
    %313 = vector.shape_cast %312 : vector<8xf32> to vector<8x1xf32>
    %cst_95 = arith.constant 3.200000e+01 : f32
    %314 = vector.broadcast %cst_95 : f32 to vector<8x1xf32>
    %315 = arith.divf %313, %314 : vector<8x1xf32>
    %316 = vector.broadcast %315 : vector<8x1xf32> to vector<8x32xf32>
    %317 = arith.subf %309, %316 : vector<8x32xf32>
    %318 = arith.mulf %317, %317 : vector<8x32xf32>
    %cst_96 = arith.constant dense<0.000000e+00> : vector<8xf32>
    %319 = vector.multi_reduction <add>, %318, %cst_96 [1] : vector<8x32xf32> to vector<8xf32>
    %320 = vector.shape_cast %319 : vector<8xf32> to vector<8x1xf32>
    %cst_97 = arith.constant 3.100000e+01 : f32
    %321 = vector.broadcast %cst_97 : f32 to vector<8x1xf32>
    %322 = arith.divf %320, %321 : vector<8x1xf32>
    %323 = math.sqrt %322 : vector<8x1xf32>
    %324 = vector.broadcast %315 : vector<8x1xf32> to vector<8x32xf32>
    %325 = arith.subf %309, %324 : vector<8x32xf32>
    %326 = vector.broadcast %310 : vector<1x32xf32> to vector<8x32xf32>
    %327 = arith.mulf %326, %325 : vector<8x32xf32>
    %cst_98 = arith.constant 9.99999997E-7 : f32
    %328 = vector.broadcast %cst_98 : f32 to vector<8x1xf32>
    %329 = arith.addf %323, %328 : vector<8x1xf32>
    %330 = vector.broadcast %329 : vector<8x1xf32> to vector<8x32xf32>
    %331 = arith.divf %327, %330 : vector<8x32xf32>
    %332 = vector.broadcast %311 : vector<1x32xf32> to vector<8x32xf32>
    %333 = arith.addf %331, %332 : vector<8x32xf32>
    %334 = arith.truncf %333 : vector<8x32xf32> to vector<8x32xbf16>
    %cst_99 = arith.constant dense<0.000000e+00> : vector<8x64xf32>
    %335 = tpu.matmul %334, %182, %cst_99 {dimension_numbers = #tpu.dot_dimension_numbers<[1], [0], [0], [1], [0, 0, 1, 1], [], []>} : vector<8x32xbf16>, vector<32x64xbf16>, vector<8x64xf32> -> vector<8x64xf32>
    %c14 = arith.constant 14 : index
    %c0_100 = arith.constant 0 : index
    %336 = vector.load %arg4[%c14, %c0_100] : memref<32x128xf32, #tpu.memory_space<vmem>>, vector<1x64xf32>
    %337 = vector.broadcast %336 : vector<1x64xf32> to vector<8x64xf32>
    %338 = arith.addf %335, %337 : vector<8x64xf32>
    %cst_101 = arith.constant 0.000000e+00 : f32
    %339 = vector.broadcast %cst_101 : f32 to vector<8x64xf32>
    %340 = arith.maximumf %338, %339 : vector<8x64xf32>
    %341 = arith.truncf %340 : vector<8x64xf32> to vector<8x64xbf16>
    %cst_102 = arith.constant dense<0.000000e+00> : vector<8x32xf32>
    %342 = tpu.matmul %341, %183, %cst_102 {dimension_numbers = #tpu.dot_dimension_numbers<[1], [1], [0], [0], [0, 0, 1, 0], [], []>} : vector<8x64xbf16>, vector<32x64xbf16>, vector<8x32xf32> -> vector<8x32xf32>
    %c15 = arith.constant 15 : index
    %c0_103 = arith.constant 0 : index
    %343 = vector.load %arg4[%c15, %c0_103] : memref<32x128xf32, #tpu.memory_space<vmem>>, vector<1x32xf32>
    %344 = vector.broadcast %343 : vector<1x32xf32> to vector<8x32xf32>
    %345 = arith.addf %342, %344 : vector<8x32xf32>
    %346 = arith.addf %309, %345 : vector<8x32xf32>
    %c16 = arith.constant 16 : index
    %c0_104 = arith.constant 0 : index
    %347 = vector.load %arg4[%c16, %c0_104] : memref<32x128xf32, #tpu.memory_space<vmem>>, vector<1x32xf32>
    %c17 = arith.constant 17 : index
    %c0_105 = arith.constant 0 : index
    %348 = vector.load %arg4[%c17, %c0_105] : memref<32x128xf32, #tpu.memory_space<vmem>>, vector<1x32xf32>
    %cst_106 = arith.constant dense<0.000000e+00> : vector<8xf32>
    %349 = vector.multi_reduction <add>, %346, %cst_106 [1] : vector<8x32xf32> to vector<8xf32>
    %350 = vector.shape_cast %349 : vector<8xf32> to vector<8x1xf32>
    %cst_107 = arith.constant 3.200000e+01 : f32
    %351 = vector.broadcast %cst_107 : f32 to vector<8x1xf32>
    %352 = arith.divf %350, %351 : vector<8x1xf32>
    %353 = vector.broadcast %352 : vector<8x1xf32> to vector<8x32xf32>
    %354 = arith.subf %346, %353 : vector<8x32xf32>
    %355 = arith.mulf %354, %354 : vector<8x32xf32>
    %cst_108 = arith.constant dense<0.000000e+00> : vector<8xf32>
    %356 = vector.multi_reduction <add>, %355, %cst_108 [1] : vector<8x32xf32> to vector<8xf32>
    %357 = vector.shape_cast %356 : vector<8xf32> to vector<8x1xf32>
    %cst_109 = arith.constant 3.100000e+01 : f32
    %358 = vector.broadcast %cst_109 : f32 to vector<8x1xf32>
    %359 = arith.divf %357, %358 : vector<8x1xf32>
    %360 = math.sqrt %359 : vector<8x1xf32>
    %361 = vector.broadcast %352 : vector<8x1xf32> to vector<8x32xf32>
    %362 = arith.subf %346, %361 : vector<8x32xf32>
    %363 = vector.broadcast %347 : vector<1x32xf32> to vector<8x32xf32>
    %364 = arith.mulf %363, %362 : vector<8x32xf32>
    %cst_110 = arith.constant 9.99999997E-7 : f32
    %365 = vector.broadcast %cst_110 : f32 to vector<8x1xf32>
    %366 = arith.addf %360, %365 : vector<8x1xf32>
    %367 = vector.broadcast %366 : vector<8x1xf32> to vector<8x32xf32>
    %368 = arith.divf %364, %367 : vector<8x32xf32>
    %369 = vector.broadcast %348 : vector<1x32xf32> to vector<8x32xf32>
    %370 = arith.addf %368, %369 : vector<8x32xf32>
    %c64 = arith.constant 64 : index
    %c0_111 = arith.constant 0 : index
    %371 = vector.load %arg3[%c64, %c0_111] : memref<96x256xbf16, #tpu.memory_space<vmem>>, vector<32x128xbf16>
    %372 = arith.truncf %370 : vector<8x32xf32> to vector<8x32xbf16>
    %cst_112 = arith.constant dense<0.000000e+00> : vector<8x128xf32>
    %373 = tpu.matmul %372, %371, %cst_112 {dimension_numbers = #tpu.dot_dimension_numbers<[1], [0], [0], [1], [0, 0, 1, 1], [], []>} : vector<8x32xbf16>, vector<32x128xbf16>, vector<8x128xf32> -> vector<8x128xf32>
    %c18 = arith.constant 18 : index
    %c0_113 = arith.constant 0 : index
    %374 = vector.load %arg4[%c18, %c0_113] : memref<32x128xf32, #tpu.memory_space<vmem>>, vector<1x128xf32>
    %375 = vector.broadcast %374 : vector<1x128xf32> to vector<8x128xf32>
    %376 = arith.addf %373, %375 : vector<8x128xf32>
    %cst_114 = arith.constant dense<0xFF800000> : vector<8xf32>
    %377 = vector.multi_reduction <maximumf>, %376, %cst_114 [1] : vector<8x128xf32> to vector<8xf32>
    %378 = vector.shape_cast %377 : vector<8xf32> to vector<8x1xf32>
    %379 = vector.broadcast %378 : vector<8x1xf32> to vector<8x128xf32>
    %380 = arith.subf %376, %379 : vector<8x128xf32>
    %381 = math.exp %380 : vector<8x128xf32>
    %cst_115 = arith.constant dense<0.000000e+00> : vector<8xf32>
    %382 = vector.multi_reduction <add>, %381, %cst_115 [1] : vector<8x128xf32> to vector<8xf32>
    %383 = vector.shape_cast %382 : vector<8xf32> to vector<8x1xf32>
    %384 = vector.broadcast %383 : vector<8x1xf32> to vector<8x128xf32>
    %385 = arith.divf %381, %384 : vector<8x128xf32>
    %c0_116 = arith.constant 0 : index
    %c0_117 = arith.constant 0 : index
    %386 = vector.load %arg5[%c0_116, %c0_117] : memref<8x128xf32, #tpu.memory_space<vmem>>, vector<8x128xf32>
    tpu.vector_store %arg5[%c0_116, %c0_117], %385 {strides = array<i32>} : memref<8x128xf32, #tpu.memory_space<vmem>>, vector<8x128xf32>,
    return
  }
  func.func @transform_0(%arg0: i32) -> (i32, i32) {
    %c0_i32 = arith.constant 0 : i32
    %c0_i32_0 = arith.constant 0 : i32
    return %arg0, %c0_i32 : i32, i32
  }
  func.func @transform_1(%arg0: i32) -> (i32, i32) {
    %c0_i32 = arith.constant 0 : i32
    %c0_i32_0 = arith.constant 0 : i32
    %c0_i32_1 = arith.constant 0 : i32
    return %c0_i32, %c0_i32_0 : i32, i32
  }
  func.func @transform_2(%arg0: i32) -> (i32, i32) {
    %c0_i32 = arith.constant 0 : i32
    %c0_i32_0 = arith.constant 0 : i32
    %c0_i32_1 = arith.constant 0 : i32
    return %c0_i32, %c0_i32_0 : i32, i32
  }
  func.func @transform_3(%arg0: i32) -> (i32, i32) {
    %c0_i32 = arith.constant 0 : i32
    %c0_i32_0 = arith.constant 0 : i32
    %c0_i32_1 = arith.constant 0 : i32
    return %c0_i32, %c0_i32_0 : i32, i32
  }
  func.func @transform_4(%arg0: i32) -> (i32, i32) {
    %c0_i32 = arith.constant 0 : i32
    %c0_i32_0 = arith.constant 0 : i32
    return %arg0, %c0_i32 : i32, i32
  }
}

</mosaic_0001>

<bundles_post_ra>
// kernel: transformer_forward.1
= control target key start
LH: loop header
LB: loop body
LE: loop exit
PB: predicated region body
PF: predicated region fallthrough
CT: control target
= control target key end

     0   :  { %9 = vsyncpa [#allocation3], 0  ;;  %s2950_s15 = smov 0   ;;  %s3393_s0 = inlined_call_operand.vmem [shape: s32[16,1], index: 0, kind: input, shape index: {}]   ;;  %s3394_s1 = inlined_call_operand.vmem [shape: bf16[128,32], index: 1, kind: input, shape index: {}]   ;;  %s3395_s2 = inlined_call_operand.vmem [shape: bf16[96,256], index: 2, kind: input, shape index: {}]   ;;  %s3396_s3 = inlined_call_operand.hbm [shape: f32[32,128], index: 3, kind: input, shape index: {}]   ;;  %s3397_s4 = inlined_call_operand.vmem [shape: f32[16,128], index: 4, kind: output, shape index: {}]  }
   0x1 LB: > { %s2956_s16 = sadd.s32 4294967295, %s2901_s15   ;;  %p2346_p0 = scmp.ge.s32.totalorder %s2901_s15, 1  ;;  %s2901_s15 = sphi %s2950_s15, %s15_s15  }
   0x2   : > { %p135_p1 = scmp.lt.s32.totalorder %s2901_s15, 3  ;;  %s2903_s17 = smov [#allocation2]  }
   0x3   : > { %s153_s18 = sshll.u32 %s2903_s17, 4  ;;  %p3398_p3 = scmp.eq.s32.totalorder %s2956_s16, 0  ;;  %s154_s18 = int_to_ptr.vmem [resolvable:$true] %s153_s18 }
   0x4   : > { %p2960_p2 = pnand %p2346_p0, %p135_p1  ;;  %s2863_s23 = scalar_lea.hbm %s3396_s3, 512 }
   0x5   : > { %p2864_p6 = scmp.ne.s32.totalorder %s3396_s3, %s2863_s23  ;;  %p2870_p10 = scmp.lt.u32.totalorder %s2863_s23, %s3396_s3 }
   0x6   : > { %s3400_s19 = scalar_select %p2960_p2, 1, 0 }
   0x7   : > { %p2752_p4 = pneg %p2960_p2 }
   0x9   : > { %p2969_p5 = pnand %p3398_p3, %p2752_p4 }
   0xb   : > { %p2865_p7 = pneg %p2969_p5 }
   0xd   : > { %p2866_p8 = pnand %p2865_p7, %p2864_p6 }
   0xf   : > { %p2867_p9 = pneg %p2866_p8 }
  0x11   : > { %p2872_p11 = pnand %p2870_p10, %p2867_p9 }
  0x13   : > { %2875 = shalt.err (!%p2872_p11)
}
  0x14   : > { %s2876_s28 = scalar_lea.vmem %s154_s18, 512  ;;  %p2884_p1 = scmp.lt.s32.totalorder %s154_s18, %s154_s18 }
  0x15   : > { %p2877_p12 = scmp.ne.s32.totalorder %s154_s18, %s2876_s28  ;;  %p2885_p4 = scmp.lt.s32.totalorder %s2876_s28, %s2876_s28 }
  0x17   : > { %p2879_p13 = pnand %p2877_p12, %p2865_p7  ;;  %p2886_p3 = por %p2885_p4, %p2884_p1 }
  0x19   : > { %p2880_p0 = pneg %p2879_p13 }
  0x1b   : > { %p2887_p2 = pnand %p2886_p3, %p2880_p0 }
  0x1d   : > { %2890 = shalt.err (!%p2887_p2)
}
  0x1e   : > { %s2904_s29 = smov 128   ;;  %s2905_s30 = smov 8  }
  0x1f   : > { %2755 = dma.hbm_to_vmem [thread:$0]  (!%p2969_p5), %s3396_s3, 512, %s154_s18, [#allocation3], %s2904_s29, %s2904_s29, %s2905_s30  }
  0x20   : > { %p3402_p6 = scmp.ne.s32.totalorder %s3400_s19, 0 }
  0x21   : > { %p3403_p8 = scmp.eq.s32.totalorder (!%p3402_p6), %s2956_s16, 0 }
  0x22   : > { %176 = sbr.rel (%p3402_p6) target bundleno = 9143 (0x23b7), region = 36 }
  0x29   : > { %2896 = dma.done.wait (%p3403_p8), [#allocation3], 512   ;;  %p3404_p7 = pmov %p3403_p8 }
  0x2a   : > { %p200_p2 = scmp.lt.s32.totalorder %s2956_s16, 1  ;;  %v2906_v0 = vmov 0   ;;  %v2907_v1 = vmov 0.0   ;;  %v2789_v3 = vld [vmem:[%s3394_s1] sm:$0xff]   ;;  %vm2908_vm0 = vmmov 0   ;;  %v2790_v4 = vld [vmem:[%s3394_s1 + $0x8] sm:$0xff]   ;;  %v210_v11 = vlaneseq }
  0x2b   : > { %2898 = vsyncadd (%p3404_p7), [#allocation3], 4294966784  ;;  %2788 = vset.pattern.permute.xlu0 %v2906_v0  ;;  %2512 = vmatprep.subr.bf16.mxu0 %v2907_v1  ;;  %v2791_v5 = vld [vmem:[%s3394_s1 + $0x10] sm:$0xff]   ;;  %v2792_v6 = vld [vmem:[%s3394_s1 + $0x18] sm:$0xff]   ;;  %v2909_v14 = vmov 1.0|1.0  }
  0x2c   : > { %s3406_s16 = smov (!%p200_p2, %s2956_s16), 1  ;;  %2532 = vmatprep.subr.bf16.mxu1 %v2907_v1  ;;  %2528 = vmatprep.mubr.msk.bf16.mxu0 %vm2908_vm0, %v2907_v1  ;;  %v2793_v7 = vld [vmem:[%s3394_s1 + $0x20] sm:$0xff]   ;;  %v2794_v8 = vld [vmem:[%s3394_s1 + $0x28] sm:$0xff]   ;;  %v2795_v9 = vld [vmem:[%s3394_s1 + $0x30] sm:$0xff]   ;;  %v211_v12 = vand.u32 127, %v210_v11  ;;  %vm336_vm3 = vcmask 261120  }
  0x2d   : > { %s2351_s7 = sshll.u32 %s3406_s16, 3  ;;  %2536 = vmatprep.mubr.msk.bf16.mxu1 %vm2908_vm0, %v2907_v1  ;;  %2513 = vmatpush3.bf16.msra.mxu0 %v2789_v3  ;;  %v2796_v10 = vld [vmem:[%s3394_s1 + $0x38] sm:$0xff]   ;;  %v3054_v28 = vld [vmem:[%s3395_s2] ss:$8 sps:$4 sm:$0xff]   ;;  %s2910_s8 = smov 96   ;;  %vm434_vm6 = vcmask 64512  }
  0x2e   : > { %s203_s10 = scalar_lea.vmem %s3393_s0, %s2351_s7  ;;  %2514 = vmatprep.subr.bf16.mxu0 %v2907_v1  ;;  %v324_v16 = vld [vmem:[#allocation2 + $0x18] sm:$0xff]  ;;  %2533 = vmatpush3.bf16.msra.mxu1 %v3054_v28  ;;  %v2364_v38 = vld [vmem:[#allocation2] ss:$0 sm:$0xff]  ;;  %v2365_v41 = vld [vmem:[#allocation2 + $0x1] ss:$0 sm:$0xff]  ;;  %s2911_s9 = smov 88  }
  0x2f   : > { %v209_v2 = vld [vmem:[%s203_s10] sm:$0xff]  ;;  %v3060_v29 = vld [vmem:[%s3395_s2 + $0x10] ss:$8 sps:$4 sm:$0xff]   ;;  %2534 = vmatprep.subr.bf16.mxu1 %v2907_v1  ;;  %s2912_s10 = smov 64   ;;  %s2913_s11 = smov 120   ;;  %vm498_vm7 = vcmask 1043456  }
  0x30   : > { %213 = vperm.xlu0 %2788, %v209_v2   ;;  %v2366_v45 = vld [vmem:[#allocation2 + $0x2] ss:$0 sm:$0xff]  ;;  %s2914_s12 = smov 56   ;;  %s2915_s13 = smov 24   ;;  %vm1201_vm10 = vcmask 523264  }
  0x31   : > { %2515 = vmatpush3.bf16.msra.mxu0 %v2790_v4  ;;  %s2916_s14 = smov 80   ;;  %s2917_s17 = smov 112  }
  0x32   : > { %2516 = vmatprep.subr.bf16.mxu0 %v2907_v1  ;;  %2535 = vmatpush3.bf16.msra.mxu1 %v3060_v29  ;;  %s2918_s18 = smov 32   ;;  %s2919_s19 = smov 48  }
  0x33   : > { %2540 = vmatprep.subr.bf16.mxu1 %v2907_v1  ;;  %s2920_s20 = smov 104   ;;  %s2921_s21 = smov 72  }
  0x34   : > { %s2922_s22 = smov 40   ;;  %s2923_s23 = smov 16  }
  0x35   : > { %2517 = vmatpush3.bf16.msra.mxu0 %v2791_v5  ;;  %s2924_s24 = smov 8  }
  0x36   : > { %2518 = vmatprep.subr.bf16.mxu0 %v2907_v1 }
  0x39   : > { %2519 = vmatpush3.bf16.msra.mxu0 %v2792_v6 }
  0x3a   : > { %2520 = vmatprep.subr.bf16.mxu0 %v2907_v1 }
  0x3d   : > { %2521 = vmatpush3.bf16.msra.mxu0 %v2793_v7 }
  0x3e   : > { %2522 = vmatprep.subr.bf16.mxu0 %v2907_v1 }
  0x41   : > { %2523 = vmatpush3.bf16.msra.mxu0 %v2794_v8 }
  0x42   : > { %2524 = vmatprep.subr.bf16.mxu0 %v2907_v1 }
  0x45   : > { %2525 = vmatpush3.bf16.msra.mxu0 %v2795_v9 }
  0x46   : > { %2526 = vmatprep.subr.bf16.mxu0 %v2907_v1 }
  0x49   : > { %2527 = vmatpush3.bf16.msra.mxu0 %v2796_v10 }
  0x4a   : > { %2558 = vmatprep.subr.bf16.mxu0 %v2907_v1 }
  0xaf   : > { %v214_v13 = vpop.permute.xlu0 %213 }
  0xb0   : > { %vm215_vm1 = vcmp.eq.s32.totalorder %v211_v12, %v214_v13 }
  0xb1   : > { %vm2362_vm2 = vmpackc.low %vm215_vm1, %vm215_vm1 }
  0xb2   : > { %2529 = vmatmul.mubr.msk.bf16.vlgmr.msra.gmra.mrb[0].mxu0 %vm2362_vm2, %v2909_v14 }
  0xb3   : > { %2560 = vmatprep.mubr.msk.bf16.mxu0 %vm2908_vm0, %v2907_v1 }
 0x185   : > { %v317_v15 = vpop.f32.mrb[0].mxu0 }
 0x186   : > { %v323_v17 = vmul.f32 5.656854, %v317_v15  ;;  %v2530_v18 = vpop.f32.mrb[1].mxu0 }
 0x187   : > { %v320_v19 = vpop.f32.mrb[2].mxu0 }
 0x188   : > { %v3045_v20 = vadd.f32 %v324_v16, %v323_v17  ;;  %v2531_v21 = vpop.f32.mrb[3].mxu0 }
 0x18a   : > { %v337_v22 = vsel %vm336_vm3, %v3045_v20, 0.0 }
 0x18b   : > { %338 = vadd.xlane.f32.xlu0 %v337_v22 }
 0x218   : > { %v339_v23 = vpop.xlane.xlu0 %338 }
 0x219   : > { %v341_v24 = vmul.f32 0.03125, %v339_v23 }
 0x21b   : > { %v342_v25 = vsub.f32 %v3045_v20, %v341_v24 }
 0x21d   : > { %v343_v26 = vmul.f32 %v342_v25, %v342_v25  ;;  %v360_v39 = vmul.f32 %v2364_v38, %v342_v25 }
 0x21f   : > { %v344_v27 = vsel %vm336_vm3, %v343_v26, 0.0 }
 0x220   : > { %345 = vadd.xlane.f32.xlu1 %v344_v27 }
 0x2ad   : > { %v346_v30 = vpop.xlane.xlu1 %345 }
 0x2ae   : > { %v348_v31 = vmul.f32 0.032258064, %v346_v30 }
 0x2b0   : > { %2807 = vrsqrt.f32 %v348_v31  ;;  %vm351_vm4 = vcmp.eq.f32.partialorder %v348_v31, inf  ;;  %v354_v34 = vand.u32 2147483648, %v348_v31  ;;  %vm353_vm5 = vcmp.eq.f32.partialorder %v348_v31, 0.0 }
 0x2ba   : > { %v2808_v32 = vpop.eup %2807 }
 0x2bb   : > { %v350_v33 = vmul.f32 %v2808_v32, %v348_v31 }
 0x2bd   : > { %v352_v35 = vsel %vm351_vm4, %v348_v31, %v350_v33 }
 0x2be   : > { %v355_v36 = vsel %vm353_vm5, %v354_v34, %v352_v35 }
 0x2bf   : > { %v361_v37 = vadd.f32 1e-06, %v355_v36 }
 0x2c1   : > { %2809 = vrcp.f32 %v361_v37 }
 0x2cb   : > { %v2810_v40 = vpop.eup %2809 }
 0x2cc   : > { %v363_v42 = vmul.f32 %v2810_v40, %v360_v39 }
 0x2ce   : > { %v368_v43 = vadd.f32 %v2365_v41, %v363_v42 }
 0x2d0   : > { %v369_v44 = vpack.c.bf16 %v368_v43, %v368_v43 }
 0x2d2   : > { %2537 = vmatmul.mubr.msk.bf16.vlgmr.msra.gmra.mrb[0].mxu1 %vm336_vm3, %v369_v44 }
 0x2d3   : > { %2542 = vmatprep.mubr.msk.bf16.mxu1 %vm2908_vm0, %v2907_v1 }
 0x3a5   : > { %v424_v46 = vpop.f32.mrb[0].mxu1 }
 0x3a6   : > { %v425_v47 = vadd.f32 %v2366_v45, %v424_v46  ;;  %v2538_v48 = vpop.f32.mrb[1].mxu1 }
 0x3a7   : > { %v427_v49 = vpop.f32.mrb[2].mxu1 }
 0x3a8   : > { %v3068_v50 = vpack.c.bf16 %v425_v47, %v425_v47  ;;  %v2539_v51 = vpop.f32.mrb[3].mxu1 }
 0x3aa   : > { %432 = vrot.lane.b32.xlu1 %v3068_v50, %s2910_s8 }
 0x41c   : > { %v433_v52 = vpop.permute.xlu1 %432 }
 0x41d   : > { %v439_v53 = vsel %vm434_vm6, %v433_v52, 0 }
 0x41e   : > { %2541 = vmatpush3.bf16.xpose.msra.mxu1 %v439_v53 }
 0x41f   : > { %2546 = vmatprep.subr.bf16.mxu1 %v2907_v1 }
 0x425   : > { %2543 = vmatmul.mubr.msk.bf16.vlgmr.msra.gmra.mrb[4].mxu1 %vm434_vm6, %v3068_v50 }
 0x426   : > { %2548 = vmatprep.mubr.msk.bf16.mxu1 %vm2908_vm0, %v2907_v1 }
 0x4f8   : > { %v475_v54 = vpop.f32.mrb[4].mxu1 }
 0x4f9   : > { %v2544_v55 = vpop.f32.mrb[5].mxu1  ;;  %v481_v56 = vsel %vm434_vm6, %v475_v54, -inf }
 0x4fa   : > { %482 = vmax.xlane.f32.xlu1 %v481_v56  ;;  %v478_v57 = vpop.f32.mrb[6].mxu1 }
 0x4fb   : > { %v2545_v58 = vpop.f32.mrb[7].mxu1 }
 0x50b   : > { %545 = vrot.lane.b32.xlu1 %v3068_v50, %s2911_s9 }
 0x587   : > { %v483_v59 = vpop.xlane.xlu1 %482 }
 0x588   : > { %v484_v60 = vsub.f32 %v475_v54, %v483_v59 }
 0x58a   : > { %v485_v61 = vmul.f32 1.442695, %v484_v60 }
 0x58b   : > { %v546_v6 = vpop.permute.xlu1 %545 }
 0x58c   : > { %2811 = vpow2.f32 %v485_v61  ;;  %v551_v8 = vsel %vm434_vm6, %v546_v6, 0 }
 0x596   : > { %v2812_v62 = vpop.eup %2811 }
 0x597   : > { %v487_v63 = vsel %vm434_vm6, %v2812_v62, 0.0 }
 0x598   : > { %488 = vadd.xlane.f32.xlu0 %v487_v63 }
 0x5ae   : > { %493 = vrot.lane.b32.xlu0 %v3068_v50, %s2912_s10 }
 0x5b2   : > { %543 = vrot.lane.b32.xlu0 %v3068_v50, %s2913_s11 }
 0x625   : > { %v489_v0 = vpop.xlane.xlu0 %488 }
 0x626   : > { %2813 = vrcp.f32 %v489_v0 }
 0x629   : > { %v494_v2 = vpop.permute.xlu0 %493 }
 0x62a   : > { %v500_v3 = vsel %vm498_vm7, %v494_v2, 0 }
 0x62b   : > { %2547 = vmatpush3.bf16.msra.mxu1 %v500_v3 }
 0x62c   : > { %2552 = vmatprep.subr.bf16.mxu1 %v2907_v1 }
 0x62d   : > { %v544_v9 = vpop.permute.xlu0 %543 }
 0x630   : > { %v2814_v4 = vpop.eup %2813 }
 0x631   : > { %v491_v5 = vmul.f32 %v2814_v4, %v2812_v62 }
 0x633   : > { %v492_v7 = vpack.c.bf16 %v491_v5, %v491_v5 }
 0x635   : > { %2549 = vmatmul.mubr.msk.bf16.vlgmr.msra.gmra.mrb[8].mxu1 %vm434_vm6, %v492_v7 }
 0x636   : > { %2553 = vmatpush3.bf16.xpose.msra.mxu1 %v551_v8  ;;  %2554 = vmatprep.mubr.msk.bf16.mxu1 %vm2908_vm0, %v2907_v1 }
 0x637   : > { %2564 = vmatprep.subr.bf16.mxu1 %v2907_v1 }
 0x63d   : > { %2555 = vmatmul.mubr.msk.bf16.vlgmr.msra.gmra.mrb[12].mxu1 %vm434_vm6, %v544_v9 }
 0x63e   : > { %2568 = vmatprep.mubr.msk.bf16.mxu1 %vm2908_vm0, %v2907_v1 }
 0x708   : > { %v3096_v10 = vpop.f32.mrb[8].mxu1 }
 0x709   : > { %v2550_v11 = vpop.f32.mrb[9].mxu1  ;;  %v542_v63 = vpack.c.bf16 %v3096_v10, %v3096_v10 }
 0x70a   : > { %v539_v12 = vpop.f32.mrb[10].mxu1 }
 0x70b   : > { %v2551_v13 = vpop.f32.mrb[11].mxu1 }
 0x710   : > { %v587_v14 = vpop.f32.mrb[12].mxu1 }
 0x711   : > { %v2556_v15 = vpop.f32.mrb[13].mxu1  ;;  %v593_v16 = vsel %vm434_vm6, %v587_v14, -inf }
 0x712   : > { %594 = vmax.xlane.f32.xlu0 %v593_v16  ;;  %v590_v17 = vpop.f32.mrb[14].mxu1 }
 0x713   : > { %v2557_v18 = vpop.f32.mrb[15].mxu1 }
 0x728   : > { %605 = vrot.lane.b32.xlu0 %v3068_v50, %s2914_s12 }
 0x72c   : > { %656 = vrot.lane.b32.xlu0 %v3060_v29, %s2915_s13 }
 0x730   : > { %762 = vrot.lane.b32.xlu0 %v3068_v50, %s2916_s14 }
 0x734   : > { %760 = vrot.lane.b32.xlu0 %v3068_v50, %s2917_s17 }
 0x738   : > { %707 = vrot.lane.b32.xlu0 %v3054_v28, %s2918_s18 }
 0x79f   : > { %v595_v19 = vpop.xlane.xlu0 %594 }
 0x7a0   : > { %v596_v21 = vsub.f32 %v587_v14, %v595_v19 }
 0x7a2   : > { %v597_v22 = vmul.f32 1.442695, %v596_v21 }
 0x7a3   : > { %v606_v23 = vpop.permute.xlu0 %605 }
 0x7a4   : > { %2815 = vpow2.f32 %v597_v22  ;;  %v611_v24 = vsel %vm498_vm7, %v606_v23, 0 }
 0x7a5   : > { %2559 = vmatpush3.bf16.msra.mxu0 %v611_v24 }
 0x7a6   : > { %2572 = vmatprep.subr.bf16.mxu0 %v2907_v1 }
 0x7a7   : > { %v657_v32 = vpop.permute.xlu0 %656 }
 0x7a8   : > { %v665_v34 = vsel %vm434_vm6, %v657_v32, 0 }
 0x7ab   : > { %v763_v37 = vpop.permute.xlu0 %762 }
 0x7ac   : > { %v768_v42 = vsel %vm434_vm6, %v763_v37, 0 }
 0x7ae   : > { %v2816_v25 = vpop.eup %2815 }
 0x7af   : > { %v599_v26 = vsel %vm434_vm6, %v2816_v25, 0.0  ;;  %v761_v44 = vpop.permute.xlu0 %760 }
 0x7b0   : > { %600 = vadd.xlane.f32.xlu1 %v599_v26 }
 0x7b3   : > { %v708_v45 = vpop.permute.xlu0 %707 }
 0x7b4   : > { %v715_v46 = vsel %vm434_vm6, %v708_v45, 0 }
 0x7c1   : > { %654 = vrot.lane.b32.xlu1 %v3054_v28, %s2915_s13 }
 0x83d   : > { %v601_v27 = vpop.xlane.xlu1 %600 }
 0x83e   : > { %2817 = vrcp.f32 %v601_v27 }
 0x841   : > { %v655_v30 = vpop.permute.xlu1 %654 }
 0x842   : > { %v662_v31 = vsel %vm434_vm6, %v655_v30, 0 }
 0x843   : > { %2565 = vmatpush3.bf16.xpose.msra.mxu1 %v662_v31 }
 0x844   : > { %2566 = vmatprep.subr.bf16.mxu1 %v2907_v1 }
 0x848   : > { %v2818_v33 = vpop.eup %2817 }
 0x849   : > { %v603_v35 = vmul.f32 %v2818_v33, %v2816_v25 }
 0x84b   : > { %v604_v36 = vpack.c.bf16 %v603_v35, %v603_v35  ;;  %2567 = vmatpush3.bf16.xpose.msra.mxu1 %v665_v34 }
 0x84c   : > { %2580 = vmatprep.subr.bf16.mxu1 %v2907_v1 }
 0x84d   : > { %2561 = vmatmul.mubr.msk.bf16.vlgmr.msra.gmra.mrb[4].mxu0 %vm434_vm6, %v604_v36 }
 0x84e   : > { %2576 = vmatprep.mubr.msk.bf16.mxu0 %vm2908_vm0, %v2907_v1  ;;  %2573 = vmatpush3.bf16.xpose.msra.mxu0 %v715_v46 }
 0x84f   : > { %2574 = vmatprep.subr.bf16.mxu0 %v2907_v1 }
 0x920   : > { %v647_v38 = vpop.f32.mrb[4].mxu0 }
 0x921   : > { %v653_v39 = vpack.c.bf16 %v647_v38, %v647_v38  ;;  %v2562_v40 = vpop.f32.mrb[5].mxu0 }
 0x922   : > { %v650_v41 = vpop.f32.mrb[6].mxu0 }
 0x923   : > { %v2563_v43 = vpop.f32.mrb[7].mxu0  ;;  %2569 = vmatmul.mubr.msk.bf16.vlgmr.msra.gmra.mrb[16].mxu1 %vm434_vm6, %v653_v39 }
 0x924   : > { %2581 = vmatpush3.bf16.xpose.msra.mxu1 %v768_v42  ;;  %2582 = vmatprep.mubr.msk.bf16.mxu1 %vm2908_vm0, %v2907_v1 }
 0x925   : > { %2592 = vmatprep.subr.bf16.mxu1 %v2907_v1 }
 0x92b   : > { %2583 = vmatmul.mubr.msk.bf16.vlgmr.msra.gmra.mrb[20].mxu1 %vm434_vm6, %v761_v44 }
 0x92c   : > { %2596 = vmatprep.mubr.msk.bf16.mxu1 %vm2908_vm0, %v2907_v1 }
 0x9f6   : > { %v701_v47 = vpop.f32.mrb[16].mxu1 }
 0x9f7   : > { %v2570_v48 = vpop.f32.mrb[17].mxu1 }
 0x9f8   : > { %v704_v49 = vpop.f32.mrb[18].mxu1 }
 0x9f9   : > { %v2571_v51 = vpop.f32.mrb[19].mxu1 }
 0x9fe   : > { %v804_v52 = vpop.f32.mrb[20].mxu1 }
 0x9ff   : > { %v2584_v53 = vpop.f32.mrb[21].mxu1  ;;  %v810_v54 = vsel %vm434_vm6, %v804_v52, -inf }
 0xa00   : > { %811 = vmax.xlane.f32.xlu1 %v810_v54  ;;  %v807_v55 = vpop.f32.mrb[22].mxu1 }
 0xa01   : > { %v2585_v56 = vpop.f32.mrb[23].mxu1 }
 0xa11   : > { %709 = vrot.lane.b32.xlu1 %v3060_v29, %s2918_s18 }
 0xa15   : > { %822 = vrot.lane.b32.xlu1 %v3068_v50, %s2919_s19 }
 0xa19   : > { %925 = vrot.lane.b32.xlu1 %v3068_v50, %s2920_s20 }
 0xa8d   : > { %v812_v57 = vpop.xlane.xlu1 %811 }
 0xa8e   : > { %v813_v58 = vsub.f32 %v804_v52, %v812_v57 }
 0xa90   : > { %v814_v59 = vmul.f32 1.442695, %v813_v58 }
 0xa91   : > { %v710_v60 = vpop.permute.xlu1 %709 }
 0xa92   : > { %2819 = vpow2.f32 %v814_v59  ;;  %v718_v61 = vsel %vm434_vm6, %v710_v60, 0  ;;  %v2382_v59 = vld [vmem:[#allocation2 + $0x3] ss:$0 sm:$0xff] }
 0xa93   : > { %2575 = vmatpush3.bf16.xpose.msra.mxu0 %v718_v61 }
 0xa94   : > { %2586 = vmatprep.subr.bf16.mxu0 %v2907_v1 }
 0xa95   : > { %v823_v62 = vpop.permute.xlu1 %822 }
 0xa96   : > { %v828_v0 = vsel %vm498_vm7, %v823_v62, 0 }
 0xa99   : > { %v926_v10 = vpop.permute.xlu1 %925 }
 0xa9a   : > { %2577 = vmatmul.mubr.msk.bf16.vlgmr.msra.gmra.mrb[8].mxu0 %vm434_vm6, %v542_v63 }
 0xa9b   : > { %2587 = vmatpush3.bf16.msra.mxu0 %v828_v0  ;;  %2588 = vmatprep.mubr.msk.bf16.mxu0 %vm2908_vm0, %v2907_v1 }
 0xa9c   : > { %v2820_v2 = vpop.eup %2819  ;;  %2600 = vmatprep.subr.bf16.mxu0 %v2907_v1 }
 0xa9d   : > { %v816_v3 = vsel %vm434_vm6, %v2820_v2, 0.0 }
 0xa9e   : > { %817 = vadd.xlane.f32.xlu0 %v816_v3 }
 0xab4   : > { %927 = vrot.lane.b32.xlu0 %v3068_v50, %s2921_s21 }
 0xb2b   : > { %v818_v4 = vpop.xlane.xlu0 %817 }
 0xb2c   : > { %2821 = vrcp.f32 %v818_v4 }
 0xb2f   : > { %v928_v7 = vpop.permute.xlu0 %927 }
 0xb30   : > { %v933_v9 = vsel %vm434_vm6, %v928_v7, 0  ;;  %v2799_v7 = vld [vmem:[%s3395_s2 + $0x4] ss:$8 sps:$4 sm:$0xff]  }
 0xb36   : > { %v2822_v5 = vpop.eup %2821 }
 0xb37   : > { %v820_v6 = vmul.f32 %v2822_v5, %v2820_v2 }
 0xb39   : > { %v821_v8 = vpack.c.bf16 %v820_v6, %v820_v6 }
 0xb3b   : > { %2589 = vmatmul.mubr.msk.bf16.vlgmr.msra.gmra.mrb[12].mxu0 %vm434_vm6, %v821_v8 }
 0xb3c   : > { %2601 = vmatpush3.bf16.xpose.msra.mxu0 %v933_v9  ;;  %2602 = vmatprep.mubr.msk.bf16.mxu0 %vm2908_vm0, %v2907_v1 }
 0xb3d   : > { %2606 = vmatprep.subr.bf16.mxu0 %v2907_v1 }
 0xb43   : > { %2603 = vmatmul.mubr.msk.bf16.vlgmr.msra.gmra.mrb[16].mxu0 %vm434_vm6, %v926_v10 }
 0xb44   : > { %2608 = vmatprep.mubr.msk.bf16.mxu0 %vm2908_vm0, %v2907_v1 }
 0xb6d   : > { %v754_v11 = vpop.f32.mrb[8].mxu0 }
 0xb6e   : > { %v3158_v12 = vadd.f32 %v754_v11, %v701_v47  ;;  %v2578_v13 = vpop.f32.mrb[9].mxu0 }
 0xb6f   : > { %v757_v14 = vpop.f32.mrb[10].mxu0 }
 0xb70   : > { %v2579_v15 = vpop.f32.mrb[11].mxu0 }
 0xc0e   : > { %v864_v16 = vpop.f32.mrb[12].mxu0 }
 0xc0f   : > { %v2590_v17 = vpop.f32.mrb[13].mxu0 }
 0xc10   : > { %v867_v18 = vpop.f32.mrb[14].mxu0 }
 0xc11   : > { %v2591_v19 = vpop.f32.mrb[15].mxu0 }
 0xc12   : > { %v2384_v19 = vld [vmem:[#allocation2 + $0x5] ss:$0 sm:$0xff] }
 0xc16   : > { %v969_v21 = vpop.f32.mrb[16].mxu0 }
 0xc17   : > { %v2604_v22 = vpop.f32.mrb[17].mxu0  ;;  %v975_v23 = vsel %vm434_vm6, %v969_v21, -inf }
 0xc18   : > { %976 = vmax.xlane.f32.xlu0 %v975_v23  ;;  %v972_v24 = vpop.f32.mrb[18].mxu0 }
 0xc19   : > { %v2605_v25 = vpop.f32.mrb[19].mxu0 }
 0xc2e   : > { %987 = vrot.lane.b32.xlu0 %v3068_v50, %s2922_s22 }
 0xc32   : > { %873 = vrot.lane.b32.xlu0 %v3060_v29, %s2923_s23 }
 0xc36   : > { %1038 = vrot.lane.b32.xlu0 %v3060_v29, %s2924_s24  ;;  %v870_v29 = vpack.c.bf16 %v864_v16, %v864_v16  ;;  %v2383_v16 = vld [vmem:[#allocation2 + $0x4] ss:$0 sm:$0xff] }
 0xca5   : > { %v977_v26 = vpop.xlane.xlu0 %976 }
 0xca6   : > { %v978_v27 = vsub.f32 %v969_v21, %v977_v26 }
 0xca8   : > { %v979_v30 = vmul.f32 1.442695, %v978_v27 }
 0xca9   : > { %v988_v31 = vpop.permute.xlu0 %987 }
 0xcaa   : > { %2823 = vpow2.f32 %v979_v30  ;;  %v993_v32 = vsel %vm498_vm7, %v988_v31, 0  ;;  %v2385_v30 = vld [vmem:[#allocation2 + $0x6] ss:$0 sm:$0xff] }
 0xcab   : > { %2607 = vmatpush3.bf16.msra.mxu0 %v993_v32 }
 0xcac   : > { %2620 = vmatprep.subr.bf16.mxu0 %v2907_v1 }
 0xcad   : > { %v874_v37 = vpop.permute.xlu0 %873 }
 0xcae   : > { %v882_v39 = vsel %vm434_vm6, %v874_v37, 0  ;;  %v2389_v37 = vld [vmem:[#allocation2 + $0x7] ss:$0 sm:$0xff] }
 0xcb1   : > { %v1039_v43 = vpop.permute.xlu0 %1038 }
 0xcb2   : > { %v1047_v44 = vsel %vm434_vm6, %v1039_v43, 0 }
 0xcb4   : > { %v2824_v33 = vpop.eup %2823 }
 0xcb5   : > { %v981_v34 = vsel %vm434_vm6, %v2824_v33, 0.0 }
 0xcb6   : > { %982 = vadd.xlane.f32.xlu1 %v981_v34 }
 0xcc7   : > { %871 = vrot.lane.b32.xlu1 %v3054_v28, %s2923_s23 }
 0xccb   : > { %1036 = vrot.lane.b32.xlu1 %v3054_v28, %s2924_s24 }
 0xd43   : > { %v983_v50 = vpop.xlane.xlu1 %982 }
 0xd44   : > { %2825 = vrcp.f32 %v983_v50 }
 0xd47   : > { %v872_v35 = vpop.permute.xlu1 %871 }
 0xd48   : > { %v879_v36 = vsel %vm434_vm6, %v872_v35, 0 }
 0xd49   : > { %2593 = vmatpush3.bf16.xpose.msra.mxu1 %v879_v36 }
 0xd4a   : > { %2594 = vmatprep.subr.bf16.mxu1 %v2907_v1 }
 0xd4b   : > { %v1037_v28 = vpop.permute.xlu1 %1036 }
 0xd4c   : > { %v1044_v42 = vsel %vm434_vm6, %v1037_v28, 0 }
 0xd4e   : > { %v2826_v38 = vpop.eup %2825 }
 0xd4f   : > { %v985_v40 = vmul.f32 %v2826_v38, %v2824_v33 }
 0xd51   : > { %2595 = vmatpush3.bf16.xpose.msra.mxu1 %v882_v39  ;;  %v986_v41 = vpack.c.bf16 %v985_v40, %v985_v40 }
 0xd52   : > { %2612 = vmatprep.subr.bf16.mxu1 %v2907_v1 }
 0xd53   : > { %2609 = vmatmul.mubr.msk.bf16.vlgmr.msra.gmra.mrb[20].mxu0 %vm434_vm6, %v986_v41 }
 0xd54   : > { %2624 = vmatprep.mubr.msk.bf16.mxu0 %vm2908_vm0, %v2907_v1  ;;  %2621 = vmatpush3.bf16.msra.mxu0 %v2799_v7 }
 0xd55   : > { %2622 = vmatprep.subr.bf16.mxu0 %v2907_v1 }
 0xd58   : > { %2597 = vmatmul.mubr.msk.bf16.vlgmr.msra.gmra.mrb[24].mxu1 %vm434_vm6, %v870_v29 }
 0xd59   : > { %2613 = vmatpush3.bf16.xpose.msra.mxu1 %v1044_v42  ;;  %2616 = vmatprep.mubr.msk.bf16.mxu1 %vm2908_vm0, %v2907_v1 }
 0xd5a   : > { %2614 = vmatprep.subr.bf16.mxu1 %v2907_v1 }
 0xd61   : > { %2615 = vmatpush3.bf16.xpose.msra.mxu1 %v1047_v44 }
 0xd62   : > { %2636 = vmatprep.subr.bf16.mxu1 %v2907_v1 }
 0xe26   : > { %v1029_v45 = vpop.f32.mrb[20].mxu0 }
 0xe27   : > { %v1035_v46 = vpack.c.bf16 %v1029_v45, %v1029_v45  ;;  %v2610_v47 = vpop.f32.mrb[21].mxu0 }
 0xe28   : > { %v1032_v48 = vpop.f32.mrb[22].mxu0 }
 0xe29   : > { %v2611_v49 = vpop.f32.mrb[23].mxu0  ;;  %2617 = vmatmul.mubr.msk.bf16.vlgmr.msra.gmra.mrb[28].mxu1 %vm434_vm6, %v1035_v46  ;;  %v3224_v48 = vld [vmem:[%s3395_s2 + $0x20] ss:$8 sps:$4 sm:$0xff]  }
 0xe2a   : > { %2640 = vmatprep.mubr.msk.bf16.mxu1 %vm2908_vm0, %v2907_v1  ;;  %2637 = vmatpush3.bf16.msra.mxu1 %v3224_v48  ;;  %v3230_v49 = vld [vmem:[%s3395_s2 + $0x30] ss:$8 sps:$4 sm:$0xff]  }
 0xe2b   : > { %v918_v51 = vpop.f32.mrb[24].mxu1  ;;  %2638 = vmatprep.subr.bf16.mxu1 %v2907_v1 }
 0xe2c   : > { %v924_v52 = vadd.f32 %v918_v51, %v3158_v12  ;;  %v2598_v53 = vpop.f32.mrb[25].mxu1 }
 0xe2d   : > { %v921_v54 = vpop.f32.mrb[26].mxu1 }
 0xe2e   : > { %v2599_v55 = vpop.f32.mrb[27].mxu1  ;;  %2639 = vmatpush3.bf16.msra.mxu1 %v3230_v49 }
 0xe2f   : > { %2644 = vmatprep.subr.bf16.mxu1 %v2907_v1 }
 0xefc   : > { %v1083_v56 = vpop.f32.mrb[28].mxu1 }
 0xefd   : > { %v1089_v57 = vadd.f32 %v1083_v56, %v924_v52  ;;  %v2618_v58 = vpop.f32.mrb[29].mxu1 }
 0xefe   : > { %v1086_v60 = vpop.f32.mrb[30].mxu1 }
 0xeff   : > { %v1090_v61 = vadd.f32 %v1089_v57, %v3045_v20  ;;  %v2619_v62 = vpop.f32.mrb[31].mxu1  ;;  %v2800_v20 = vld [vmem:[%s3395_s2 + $0x14] ss:$8 sps:$4 sm:$0xff]  }
 0xf00   : > { %2623 = vmatpush3.bf16.msra.mxu0 %v2800_v20  ;;  %v2392_v62 = vld [vmem:[#allocation2 + $0x9] ss:$0 sm:$0xff] }
 0xf01   : > { %v1096_v63 = vadd.f32 %v2382_v59, %v1090_v61  ;;  %2628 = vmatprep.subr.bf16.mxu0 %v2907_v1  ;;  %v2391_v59 = vld [vmem:[#allocation2 + $0x8] ss:$0 sm:$0xff] }
 0xf03   : > { %v1099_v0 = vsel %vm336_vm3, %v1096_v63, 0.0 }
 0xf04   : > { %1100 = vadd.xlane.f32.xlu1 %v1099_v0 }
 0xf15   : > { %1199 = vrot.lane.b32.xlu1 %v2800_v20, %s2912_s10 }
 0xf91   : > { %v1101_v2 = vpop.xlane.xlu1 %1100 }
 0xf92   : > { %v1102_v3 = vmul.f32 0.03125, %v1101_v2 }
 0xf94   : > { %v1103_v4 = vsub.f32 %v1096_v63, %v1102_v3  ;;  %v2393_v3 = vld [vmem:[#allocation2 + $0xa] ss:$0 sm:$0xff] }
 0xf95   : > { %v1200_v26 = vpop.permute.xlu1 %1199 }
 0xf96   : > { %v1104_v5 = vmul.f32 %v1103_v4, %v1103_v4  ;;  %v1120_v17 = vmul.f32 %v2383_v16, %v1103_v4  ;;  %v1209_v27 = vsel %vm1201_vm10, %v1200_v26, 0 }
 0xf98   : > { %v1105_v6 = vsel %vm336_vm3, %v1104_v5, 0.0 }
 0xf99   : > { %1106 = vadd.xlane.f32.xlu0 %v1105_v6 }
 0xfaf   : > { %1197 = vrot.lane.b32.xlu0 %v2799_v7, %s2912_s10 }
0x1026   : > { %v1107_v8 = vpop.xlane.xlu0 %1106 }
0x1027   : > { %v1108_v9 = vmul.f32 0.032258064, %v1107_v8 }
0x1029   : > { %2827 = vrsqrt.f32 %v1108_v9  ;;  %vm1111_vm8 = vcmp.eq.f32.partialorder %v1108_v9, inf  ;;  %v1114_v12 = vand.u32 2147483648, %v1108_v9  ;;  %vm1113_vm9 = vcmp.eq.f32.partialorder %v1108_v9, 0.0 }
0x102a   : > { %v1198_v22 = vpop.permute.xlu0 %1197 }
0x102b   : > { %v1206_v25 = vsel %vm1201_vm10, %v1198_v22, 0 }
0x1033   : > { %v2828_v10 = vpop.eup %2827 }
0x1034   : > { %v1110_v11 = vmul.f32 %v2828_v10, %v1108_v9 }
0x1036   : > { %v1112_v13 = vsel %vm1111_vm8, %v1108_v9, %v1110_v11 }
0x1037   : > { %v1115_v14 = vsel %vm1113_vm9, %v1114_v12, %v1112_v13 }
0x1038   : > { %v1121_v15 = vadd.f32 1e-06, %v1115_v14 }
0x103a   : > { %2829 = vrcp.f32 %v1121_v15 }
0x1044   : > { %v2830_v18 = vpop.eup %2829 }
0x1045   : > { %v1123_v21 = vmul.f32 %v2830_v18, %v1120_v17 }
0x1047   : > { %v1128_v23 = vadd.f32 %v2384_v19, %v1123_v21 }
0x1049   : > { %v1129_v24 = vpack.c.bf16 %v1128_v23, %v1128_v23 }
0x104b   : > { %2625 = vmatmul.mubr.msk.bf16.vlgmr.msra.gmra.mrb[24].mxu0 %vm336_vm3, %v1129_v24 }
0x104c   : > { %2629 = vmatpush3.bf16.xpose.msra.mxu0 %v1206_v25  ;;  %2632 = vmatprep.mubr.msk.bf16.mxu0 %vm2908_vm0, %v2907_v1 }
0x104d   : > { %2630 = vmatprep.subr.bf16.mxu0 %v2907_v1 }
0x1054   : > { %2631 = vmatpush3.bf16.xpose.msra.mxu0 %v1209_v27 }
0x1055   : > { %2650 = vmatprep.subr.bf16.mxu0 %v2907_v1 }
0x111e   : > { %v1184_v31 = vpop.f32.mrb[24].mxu0 }
0x111f   : > { %v1185_v32 = vadd.f32 %v2385_v30, %v1184_v31  ;;  %v2626_v33 = vpop.f32.mrb[25].mxu0 }
0x1120   : > { %v1187_v34 = vpop.f32.mrb[26].mxu0 }
0x1121   : > { %v1190_v50 = vmax.f32 %v1185_v32, 0.0  ;;  %v2627_v35 = vpop.f32.mrb[27].mxu0 }
0x1123   : > { %v1191_v36 = vpack.c.bf16 %v1190_v50, %v1190_v50 }
0x1125   : > { %2633 = vmatmul.mubr.msk.bf16.vlgmr.msra.gmra.mrb[28].mxu0 %vm1201_vm10, %v1191_v36 }
0x1126   : > { %2652 = vmatprep.mubr.msk.bf16.mxu0 %vm2908_vm0, %v2907_v1 }
0x11f8   : > { %v1245_v38 = vpop.f32.mrb[28].mxu0 }
0x11f9   : > { %v1246_v39 = vadd.f32 %v2389_v37, %v1245_v38  ;;  %v2634_v40 = vpop.f32.mrb[29].mxu0 }
0x11fa   : > { %v1248_v41 = vpop.f32.mrb[30].mxu0 }
0x11fb   : > { %v3215_v28 = vadd.f32 %v1246_v39, %v1096_v63  ;;  %v2635_v29 = vpop.f32.mrb[31].mxu0 }
0x11fd   : > { %v1262_v42 = vsel %vm336_vm3, %v3215_v28, 0.0 }
0x11fe   : > { %1263 = vadd.xlane.f32.xlu1 %v1262_v42 }
0x128b   : > { %v1264_v43 = vpop.xlane.xlu1 %1263 }
0x128c   : > { %v1265_v44 = vmul.f32 0.03125, %v1264_v43 }
0x128e   : > { %v1266_v45 = vsub.f32 %v3215_v28, %v1265_v44 }
0x1290   : > { %v1267_v46 = vmul.f32 %v1266_v45, %v1266_v45  ;;  %v1283_v60 = vmul.f32 %v2391_v59, %v1266_v45 }
0x1292   : > { %v1268_v47 = vsel %vm336_vm3, %v1267_v46, 0.0 }
0x1293   : > { %1269 = vadd.xlane.f32.xlu0 %v1268_v47 }
0x1320   : > { %v1270_v51 = vpop.xlane.xlu0 %1269 }
0x1321   : > { %v1271_v52 = vmul.f32 0.032258064, %v1270_v51 }
0x1323   : > { %2831 = vrsqrt.f32 %v1271_v52  ;;  %vm1274_vm11 = vcmp.eq.f32.partialorder %v1271_v52, inf  ;;  %v1277_v55 = vand.u32 2147483648, %v1271_v52  ;;  %vm1276_vm12 = vcmp.eq.f32.partialorder %v1271_v52, 0.0 }
0x132d   : > { %v2832_v53 = vpop.eup %2831 }
0x132e   : > { %v1273_v54 = vmul.f32 %v2832_v53, %v1271_v52 }
0x1330   : > { %v1275_v56 = vsel %vm1274_vm11, %v1271_v52, %v1273_v54 }
0x1331   : > { %v1278_v57 = vsel %vm1276_vm12, %v1277_v55, %v1275_v56 }
0x1332   : > { %v1284_v58 = vadd.f32 1e-06, %v1278_v57 }
0x1334   : > { %2833 = vrcp.f32 %v1284_v58 }
0x133e   : > { %v2834_v61 = vpop.eup %2833 }
0x133f   : > { %v1286_v63 = vmul.f32 %v2834_v61, %v1283_v60 }
0x1341   : > { %v1291_v0 = vadd.f32 %v2392_v62, %v1286_v63 }
0x1343   : > { %v1292_v2 = vpack.c.bf16 %v1291_v0, %v1291_v0 }
0x1345   : > { %2641 = vmatmul.mubr.msk.bf16.vlgmr.msra.gmra.mrb[32].mxu1 %vm336_vm3, %v1292_v2 }
0x1346   : > { %2646 = vmatprep.mubr.msk.bf16.mxu1 %vm2908_vm0, %v2907_v1 }
0x1418   : > { %v1347_v4 = vpop.f32.mrb[32].mxu1 }
0x1419   : > { %v1348_v5 = vadd.f32 %v2393_v3, %v1347_v4  ;;  %v2642_v6 = vpop.f32.mrb[33].mxu1 }
0x141a   : > { %v1350_v7 = vpop.f32.mrb[34].mxu1 }
0x141b   : > { %v3238_v20 = vpack.c.bf16 %v1348_v5, %v1348_v5  ;;  %v2643_v8 = vpop.f32.mrb[35].mxu1 }
0x141d   : > { %1466 = vrot.lane.b32.xlu1 %v3238_v20, %s2911_s9  ;;  %1355 = vrot.lane.b32.xlu0 %v3238_v20, %s2910_s8 }
0x1421   : > { %1464 = vrot.lane.b32.xlu1 %v3238_v20, %s2913_s11 }
0x148f   : > { %v1356_v9 = vpop.permute.xlu0 %1355  ;;  %v1467_v11 = vpop.permute.xlu1 %1466 }
0x1490   : > { %v1361_v10 = vsel %vm434_vm6, %v1356_v9, 0  ;;  %v1472_v12 = vsel %vm434_vm6, %v1467_v11, 0 }
0x1491   : > { %2645 = vmatpush3.bf16.xpose.msra.mxu1 %v1361_v10 }
0x1492   : > { %2656 = vmatprep.subr.bf16.mxu1 %v2907_v1 }
0x1493   : > { %v1465_v13 = vpop.permute.xlu1 %1464 }
0x1498   : > { %2647 = vmatmul.mubr.msk.bf16.vlgmr.msra.gmra.mrb[36].mxu1 %vm434_vm6, %v3238_v20 }
0x1499   : > { %2657 = vmatpush3.bf16.xpose.msra.mxu1 %v1472_v12  ;;  %2658 = vmatprep.mubr.msk.bf16.mxu1 %vm2908_vm0, %v2907_v1 }
0x149a   : > { %2668 = vmatprep.subr.bf16.mxu1 %v2907_v1 }
0x14a0   : > { %2659 = vmatmul.mubr.msk.bf16.vlgmr.msra.gmra.mrb[40].mxu1 %vm434_vm6, %v1465_v13 }
0x14a1   : > { %2672 = vmatprep.mubr.msk.bf16.mxu1 %vm2908_vm0, %v2907_v1 }
0x156b   : > { %v1397_v14 = vpop.f32.mrb[36].mxu1 }
0x156c   : > { %v2648_v15 = vpop.f32.mrb[37].mxu1  ;;  %v1403_v16 = vsel %vm434_vm6, %v1397_v14, -inf }
0x156d   : > { %1404 = vmax.xlane.f32.xlu0 %v1403_v16  ;;  %v1400_v17 = vpop.f32.mrb[38].mxu1 }
0x156e   : > { %v2649_v18 = vpop.f32.mrb[39].mxu1 }
0x1573   : > { %v1508_v19 = vpop.f32.mrb[40].mxu1 }
0x1574   : > { %v2660_v21 = vpop.f32.mrb[41].mxu1  ;;  %v1514_v22 = vsel %vm434_vm6, %v1508_v19, -inf }
0x1575   : > { %1515 = vmax.xlane.f32.xlu1 %v1514_v22  ;;  %v1511_v23 = vpop.f32.mrb[42].mxu1 }
0x1576   : > { %v2661_v24 = vpop.f32.mrb[43].mxu1 }
0x1586   : > { %1415 = vrot.lane.b32.xlu1 %v3238_v20, %s2912_s10 }
0x158a   : > { %1575 = vrot.lane.b32.xlu1 %v3224_v48, %s2915_s13 }
0x158e   : > { %1577 = vrot.lane.b32.xlu1 %v3230_v49, %s2915_s13 }
0x1592   : > { %1681 = vrot.lane.b32.xlu1 %v3238_v20, %s2917_s17 }
0x1596   : > { %1630 = vrot.lane.b32.xlu1 %v3230_v49, %s2918_s18 }
0x15fa   : > { %v1405_v25 = vpop.xlane.xlu0 %1404 }
0x15fb   : > { %v1406_v26 = vsub.f32 %v1397_v14, %v1405_v25 }
0x15fd   : > { %v1407_v27 = vmul.f32 1.442695, %v1406_v26 }
0x15ff   : > { %2835 = vpow2.f32 %v1407_v27 }
0x1602   : > { %v1516_v30 = vpop.xlane.xlu1 %1515 }
0x1603   : > { %v1517_v31 = vsub.f32 %v1508_v19, %v1516_v30 }
0x1605   : > { %v1518_v32 = vmul.f32 1.442695, %v1517_v31 }
0x1606   : > { %v1416_v33 = vpop.permute.xlu1 %1415 }
0x1607   : > { %2837 = vpow2.f32 %v1518_v32  ;;  %v1421_v34 = vsel %vm498_vm7, %v1416_v33, 0 }
0x1608   : > { %2651 = vmatpush3.bf16.msra.mxu0 %v1421_v34 }
0x1609   : > { %v2836_v50 = vpop.eup %2835  ;;  %2662 = vmatprep.subr.bf16.mxu0 %v2907_v1 }
0x160a   : > { %v1576_v35 = vpop.permute.xlu1 %1575  ;;  %v1409_v36 = vsel %vm434_vm6, %v2836_v50, 0.0 }
0x160b   : > { %v1583_v37 = vsel %vm434_vm6, %v1576_v35, 0  ;;  %1410 = vadd.xlane.f32.xlu0 %v1409_v36 }
0x160c   : > { %2669 = vmatpush3.bf16.xpose.msra.mxu1 %v1583_v37 }
0x160d   : > { %2670 = vmatprep.subr.bf16.mxu1 %v2907_v1 }
0x160e   : > { %v1578_v38 = vpop.permute.xlu1 %1577 }
0x160f   : > { %v1586_v40 = vsel %vm434_vm6, %v1578_v38, 0 }
0x1611   : > { %v2838_v39 = vpop.eup %2837 }
0x1612   : > { %v1520_v41 = vsel %vm434_vm6, %v2838_v39, 0.0  ;;  %v1682_v2 = vpop.permute.xlu1 %1681 }
0x1613   : > { %1521 = vadd.xlane.f32.xlu0 %v1520_v41 }
0x1614   : > { %2671 = vmatpush3.bf16.xpose.msra.mxu1 %v1586_v40 }
0x1615   : > { %2684 = vmatprep.subr.bf16.mxu1 %v2907_v1 }
0x1616   : > { %v1631_v17 = vpop.permute.xlu1 %1630 }
0x1617   : > { %v1639_v18 = vsel %vm434_vm6, %v1631_v17, 0 }
0x1629   : > { %1526 = vrot.lane.b32.xlu0 %v3238_v20, %s2914_s12 }
0x162d   : > { %1683 = vrot.lane.b32.xlu0 %v3238_v20, %s2916_s14 }
0x1698   : > { %v1411_v29 = vpop.xlane.xlu0 %1410 }
0x1699   : > { %2839 = vrcp.f32 %v1411_v29 }
0x16a0   : > { %v1522_v42 = vpop.xlane.xlu0 %1521 }
0x16a1   : > { %2841 = vrcp.f32 %v1522_v42 }
0x16a3   : > { %v2840_v43 = vpop.eup %2839 }
0x16a4   : > { %v1413_v44 = vmul.f32 %v2840_v43, %v2836_v50  ;;  %v1527_v45 = vpop.permute.xlu0 %1526 }
0x16a5   : > { %v1532_v47 = vsel %vm498_vm7, %v1527_v45, 0 }
0x16a6   : > { %v1414_v46 = vpack.c.bf16 %v1413_v44, %v1413_v44 }
0x16a8   : > { %2653 = vmatmul.mubr.msk.bf16.vlgmr.msra.gmra.mrb[32].mxu0 %vm434_vm6, %v1414_v46  ;;  %v1684_v58 = vpop.permute.xlu0 %1683 }
0x16a9   : > { %2663 = vmatpush3.bf16.msra.mxu0 %v1532_v47  ;;  %2664 = vmatprep.mubr.msk.bf16.mxu0 %vm2908_vm0, %v2907_v1  ;;  %v1689_v63 = vsel %vm434_vm6, %v1684_v58, 0 }
0x16aa   : > { %2676 = vmatprep.subr.bf16.mxu0 %v2907_v1 }
0x16ab   : > { %v2842_v51 = vpop.eup %2841 }
0x16ac   : > { %v1524_v52 = vmul.f32 %v2842_v51, %v2838_v39 }
0x16ae   : > { %v1525_v53 = vpack.c.bf16 %v1524_v52, %v1524_v52 }
0x16b0   : > { %2665 = vmatmul.mubr.msk.bf16.vlgmr.msra.gmra.mrb[36].mxu0 %vm434_vm6, %v1525_v53 }
0x16b1   : > { %2680 = vmatprep.mubr.msk.bf16.mxu0 %vm2908_vm0, %v2907_v1 }
0x177b   : > { %v1457_v54 = vpop.f32.mrb[32].mxu0 }
0x177c   : > { %v2654_v55 = vpop.f32.mrb[33].mxu0  ;;  %v1463_v23 = vpack.c.bf16 %v1457_v54, %v1457_v54 }
0x177d   : > { %v1460_v56 = vpop.f32.mrb[34].mxu0 }
0x177e   : > { %v2655_v57 = vpop.f32.mrb[35].mxu0 }
0x1783   : > { %v1568_v59 = vpop.f32.mrb[36].mxu0 }
0x1784   : > { %v1574_v60 = vpack.c.bf16 %v1568_v59, %v1568_v59  ;;  %v2666_v61 = vpop.f32.mrb[37].mxu0 }
0x1785   : > { %v1571_v62 = vpop.f32.mrb[38].mxu0 }
0x1786   : > { %v2667_v0 = vpop.f32.mrb[39].mxu0  ;;  %2673 = vmatmul.mubr.msk.bf16.vlgmr.msra.gmra.mrb[44].mxu1 %vm434_vm6, %v1574_v60 }
0x1787   : > { %2685 = vmatpush3.bf16.xpose.msra.mxu1 %v1689_v63  ;;  %2686 = vmatprep.mubr.msk.bf16.mxu1 %vm2908_vm0, %v2907_v1 }
0x1788   : > { %2696 = vmatprep.subr.bf16.mxu1 %v2907_v1 }
0x178e   : > { %2687 = vmatmul.mubr.msk.bf16.vlgmr.msra.gmra.mrb[48].mxu1 %vm434_vm6, %v1682_v2 }
0x178f   : > { %2700 = vmatprep.mubr.msk.bf16.mxu1 %vm2908_vm0, %v2907_v1 }
0x1859   : > { %v1622_v3 = vpop.f32.mrb[44].mxu1 }
0x185a   : > { %v2674_v4 = vpop.f32.mrb[45].mxu1 }
0x185b   : > { %v1625_v5 = vpop.f32.mrb[46].mxu1 }
0x185c   : > { %v2675_v6 = vpop.f32.mrb[47].mxu1 }
0x1861   : > { %v1725_v7 = vpop.f32.mrb[48].mxu1 }
0x1862   : > { %v2688_v8 = vpop.f32.mrb[49].mxu1  ;;  %v1731_v9 = vsel %vm434_vm6, %v1725_v7, -inf }
0x1863   : > { %1732 = vmax.xlane.f32.xlu0 %v1731_v9  ;;  %v1728_v10 = vpop.f32.mrb[50].mxu1 }
0x1864   : > { %v2689_v11 = vpop.f32.mrb[51].mxu1 }
0x1879   : > { %1628 = vrot.lane.b32.xlu0 %v3224_v48, %s2918_s18 }
0x187d   : > { %1743 = vrot.lane.b32.xlu0 %v3238_v20, %s2919_s19 }
0x1881   : > { %1846 = vrot.lane.b32.xlu0 %v3238_v20, %s2920_s20  ;;  %s207_s20 = scalar_lea.vmem %s3397_s4, %s2351_s7 }
0x18f0   : > { %v1733_v12 = vpop.xlane.xlu0 %1732 }
0x18f1   : > { %v1734_v13 = vsub.f32 %v1725_v7, %v1733_v12 }
0x18f3   : > { %v1735_v14 = vmul.f32 1.442695, %v1734_v13 }
0x18f4   : > { %v1629_v15 = vpop.permute.xlu0 %1628 }
0x18f5   : > { %2843 = vpow2.f32 %v1735_v14  ;;  %v1636_v16 = vsel %vm434_vm6, %v1629_v15, 0 }
0x18f6   : > { %2677 = vmatpush3.bf16.xpose.msra.mxu0 %v1636_v16  ;;  %v2409_v16 = vld [vmem:[#allocation2 + $0xb] ss:$0 sm:$0xff] }
0x18f7   : > { %2678 = vmatprep.subr.bf16.mxu0 %v2907_v1 }
0x18f8   : > { %v1744_v22 = vpop.permute.xlu0 %1743 }
0x18f9   : > { %v1749_v24 = vsel %vm498_vm7, %v1744_v22, 0 }
0x18fc   : > { %v1847_v33 = vpop.permute.xlu0 %1846 }
0x18fe   : > { %2679 = vmatpush3.bf16.xpose.msra.mxu0 %v1639_v18 }
0x18ff   : > { %v2844_v19 = vpop.eup %2843  ;;  %2690 = vmatprep.subr.bf16.mxu0 %v2907_v1 }
0x1900   : > { %v1737_v21 = vsel %vm434_vm6, %v2844_v19, 0.0 }
0x1901   : > { %1738 = vadd.xlane.f32.xlu1 %v1737_v21 }
0x1905   : > { %2681 = vmatmul.mubr.msk.bf16.vlgmr.msra.gmra.mrb[40].mxu0 %vm434_vm6, %v1463_v23 }
0x1906   : > { %2691 = vmatpush3.bf16.msra.mxu0 %v1749_v24  ;;  %2692 = vmatprep.mubr.msk.bf16.mxu0 %vm2908_vm0, %v2907_v1 }
0x1907   : > { %2704 = vmatprep.subr.bf16.mxu0 %v2907_v1 }
0x1912   : > { %1848 = vrot.lane.b32.xlu1 %v3238_v20, %s2921_s21 }
0x198e   : > { %v1739_v25 = vpop.xlane.xlu1 %1738 }
0x198f   : > { %2845 = vrcp.f32 %v1739_v25 }
0x1992   : > { %v1849_v30 = vpop.permute.xlu1 %1848 }
0x1993   : > { %v1854_v32 = vsel %vm434_vm6, %v1849_v30, 0  ;;  %v2803_v30 = vld [vmem:[%s3395_s2 + $0x24] ss:$8 sps:$4 sm:$0xff]  }
0x1999   : > { %v2846_v26 = vpop.eup %2845 }
0x199a   : > { %v1741_v27 = vmul.f32 %v2846_v26, %v2844_v19 }
0x199c   : > { %v1742_v31 = vpack.c.bf16 %v1741_v27, %v1741_v27 }
0x199e   : > { %2693 = vmatmul.mubr.msk.bf16.vlgmr.msra.gmra.mrb[44].mxu0 %vm434_vm6, %v1742_v31 }
0x199f   : > { %2705 = vmatpush3.bf16.xpose.msra.mxu0 %v1854_v32  ;;  %2706 = vmatprep.mubr.msk.bf16.mxu0 %vm2908_vm0, %v2907_v1 }
0x19a0   : > { %2710 = vmatprep.subr.bf16.mxu0 %v2907_v1 }
0x19a6   : > { %2707 = vmatmul.mubr.msk.bf16.vlgmr.msra.gmra.mrb[48].mxu0 %vm434_vm6, %v1847_v33 }
0x19a7   : > { %2712 = vmatprep.mubr.msk.bf16.mxu0 %vm2908_vm0, %v2907_v1 }
0x19d8   : > { %v1675_v34 = vpop.f32.mrb[40].mxu0 }
0x19d9   : > { %v1676_v50 = vadd.f32 %v1675_v34, %v1622_v3  ;;  %v2682_v35 = vpop.f32.mrb[41].mxu0 }
0x19da   : > { %v1678_v36 = vpop.f32.mrb[42].mxu0 }
0x19db   : > { %v2683_v37 = vpop.f32.mrb[43].mxu0 }
0x1a71   : > { %v1785_v38 = vpop.f32.mrb[44].mxu0 }
0x1a72   : > { %v2694_v39 = vpop.f32.mrb[45].mxu0 }
0x1a73   : > { %v1788_v40 = vpop.f32.mrb[46].mxu0 }
0x1a74   : > { %v2695_v41 = vpop.f32.mrb[47].mxu0 }
0x1a75   : > { %v2411_v41 = vld [vmem:[#allocation2 + $0xd] ss:$0 sm:$0xff] }
0x1a79   : > { %v1890_v29 = vpop.f32.mrb[48].mxu0 }
0x1a7a   : > { %v2708_v42 = vpop.f32.mrb[49].mxu0  ;;  %v1896_v43 = vsel %vm434_vm6, %v1890_v29, -inf }
0x1a7b   : > { %1897 = vmax.xlane.f32.xlu1 %v1896_v43  ;;  %v1893_v44 = vpop.f32.mrb[50].mxu0 }
0x1a7c   : > { %v2709_v45 = vpop.f32.mrb[51].mxu0 }
0x1a8c   : > { %1792 = vrot.lane.b32.xlu1 %v3224_v48, %s2923_s23 }
0x1a90   : > { %1794 = vrot.lane.b32.xlu1 %v3230_v49, %s2923_s23 }
0x1a94   : > { %1959 = vrot.lane.b32.xlu1 %v3230_v49, %s2924_s24  ;;  %v1791_v49 = vpack.c.bf16 %v1785_v38, %v1785_v38  ;;  %v2410_v38 = vld [vmem:[#allocation2 + $0xc] ss:$0 sm:$0xff] }
0x1b08   : > { %v1898_v46 = vpop.xlane.xlu1 %1897 }
0x1b09   : > { %v1899_v47 = vsub.f32 %v1890_v29, %v1898_v46 }
0x1b0b   : > { %v1900_v51 = vmul.f32 1.442695, %v1899_v47 }
0x1b0c   : > { %v1793_v52 = vpop.permute.xlu1 %1792 }
0x1b0d   : > { %2847 = vpow2.f32 %v1900_v51  ;;  %v1800_v53 = vsel %vm434_vm6, %v1793_v52, 0  ;;  %v2412_v51 = vld [vmem:[#allocation2 + $0xe] ss:$0 sm:$0xff] }
0x1b0e   : > { %2697 = vmatpush3.bf16.xpose.msra.mxu1 %v1800_v53 }
0x1b0f   : > { %2698 = vmatprep.subr.bf16.mxu1 %v2907_v1 }
0x1b10   : > { %v1795_v54 = vpop.permute.xlu1 %1794 }
0x1b11   : > { %v1803_v55 = vsel %vm434_vm6, %v1795_v54, 0 }
0x1b16   : > { %2699 = vmatpush3.bf16.xpose.msra.mxu1 %v1803_v55 }
0x1b17   : > { %v2848_v56 = vpop.eup %2847  ;;  %2716 = vmatprep.subr.bf16.mxu1 %v2907_v1 }
0x1b18   : > { %v1902_v57 = vsel %vm434_vm6, %v2848_v56, 0.0 }
0x1b19   : > { %1903 = vadd.xlane.f32.xlu0 %v1902_v57 }
0x1b1d   : > { %2701 = vmatmul.mubr.msk.bf16.vlgmr.msra.gmra.mrb[52].mxu1 %vm434_vm6, %v1791_v49 }
0x1b1e   : > { %2720 = vmatprep.mubr.msk.bf16.mxu1 %vm2908_vm0, %v2907_v1 }
0x1b2f   : > { %1908 = vrot.lane.b32.xlu0 %v3238_v20, %s2922_s22  ;;  %v1960_v20 = vpop.permute.xlu1 %1959 }
0x1b33   : > { %1957 = vrot.lane.b32.xlu0 %v3224_v48, %s2924_s24  ;;  %v1968_v48 = vsel %vm434_vm6, %v1960_v20, 0 }
0x1ba6   : > { %v1904_v58 = vpop.xlane.xlu0 %1903 }
0x1ba7   : > { %2849 = vrcp.f32 %v1904_v58  ;;  %v2416_v58 = vld [vmem:[#allocation2 + $0xf] ss:$0 sm:$0xff] }
0x1baa   : > { %v1909_v59 = vpop.permute.xlu0 %1908 }
0x1bab   : > { %v1914_v60 = vsel %vm498_vm7, %v1909_v59, 0 }
0x1bac   : > { %2711 = vmatpush3.bf16.msra.mxu0 %v1914_v60 }
0x1bad   : > { %2724 = vmatprep.subr.bf16.mxu0 %v2907_v1 }
0x1bae   : > { %v1958_v61 = vpop.permute.xlu0 %1957 }
0x1baf   : > { %v1965_v62 = vsel %vm434_vm6, %v1958_v61, 0 }
0x1bb0   : > { %2717 = vmatpush3.bf16.xpose.msra.mxu1 %v1965_v62 }
0x1bb1   : > { %v2850_v63 = vpop.eup %2849  ;;  %2718 = vmatprep.subr.bf16.mxu1 %v2907_v1 }
0x1bb2   : > { %v1906_v0 = vmul.f32 %v2850_v63, %v2848_v56 }
0x1bb4   : > { %v1907_v2 = vpack.c.bf16 %v1906_v0, %v1906_v0 }
0x1bb6   : > { %2713 = vmatmul.mubr.msk.bf16.vlgmr.msra.gmra.mrb[52].mxu0 %vm434_vm6, %v1907_v2 }
0x1bb7   : > { %2728 = vmatprep.mubr.msk.bf16.mxu0 %vm2908_vm0, %v2907_v1  ;;  %2725 = vmatpush3.bf16.msra.mxu0 %v2803_v30 }
0x1bb8   : > { %2719 = vmatpush3.bf16.xpose.msra.mxu1 %v1968_v48  ;;  %2726 = vmatprep.subr.bf16.mxu0 %v2907_v1 }
0x1bb9   : > { %2740 = vmatprep.subr.bf16.mxu1 %v2907_v1 }
0x1bf0   : > { %v1839_v3 = vpop.f32.mrb[52].mxu1 }
0x1bf1   : > { %v1845_v4 = vadd.f32 %v1839_v3, %v1676_v50  ;;  %v2702_v5 = vpop.f32.mrb[53].mxu1 }
0x1bf2   : > { %v1842_v6 = vpop.f32.mrb[54].mxu1 }
0x1bf3   : > { %v2703_v7 = vpop.f32.mrb[55].mxu1  ;;  %v2805_v6 = vld [vmem:[%s3395_s2 + $0x40] ss:$8 sps:$4 sm:$0xff]  }
0x1bf4   : > { %v2806_v7 = vld [vmem:[%s3395_s2 + $0x50] ss:$8 sps:$4 sm:$0xff]  }
0x1c89   : > { %v1950_v8 = vpop.f32.mrb[52].mxu0 }
0x1c8a   : > { %v1956_v9 = vpack.c.bf16 %v1950_v8, %v1950_v8  ;;  %v2714_v10 = vpop.f32.mrb[53].mxu0 }
0x1c8b   : > { %v1953_v11 = vpop.f32.mrb[54].mxu0 }
0x1c8c   : > { %v2715_v12 = vpop.f32.mrb[55].mxu0  ;;  %2721 = vmatmul.mubr.msk.bf16.vlgmr.msra.gmra.mrb[56].mxu1 %vm434_vm6, %v1956_v9 }
0x1c8d   : > { %2744 = vmatprep.mubr.msk.bf16.mxu1 %vm2908_vm0, %v2907_v1  ;;  %2741 = vmatpush3.bf16.msra.mxu1 %v2805_v6 }
0x1c8e   : > { %2742 = vmatprep.subr.bf16.mxu1 %v2907_v1 }
0x1c91   : > { %2743 = vmatpush3.bf16.msra.mxu1 %v2806_v7 }
0x1d5f   : > { %v2004_v13 = vpop.f32.mrb[56].mxu1 }
0x1d60   : > { %v2010_v14 = vadd.f32 %v2004_v13, %v1845_v4  ;;  %v2722_v15 = vpop.f32.mrb[57].mxu1 }
0x1d61   : > { %v2007_v17 = vpop.f32.mrb[58].mxu1 }
0x1d62   : > { %v2011_v18 = vadd.f32 %v2010_v14, %v3215_v28  ;;  %v2723_v19 = vpop.f32.mrb[59].mxu1  ;;  %v2804_v28 = vld [vmem:[%s3395_s2 + $0x34] ss:$8 sps:$4 sm:$0xff]  }
0x1d63   : > { %2727 = vmatpush3.bf16.msra.mxu0 %v2804_v28  ;;  %v2419_v19 = vld [vmem:[#allocation2 + $0x11] ss:$0 sm:$0xff] }
0x1d64   : > { %v2017_v21 = vadd.f32 %v2409_v16, %v2011_v18  ;;  %2732 = vmatprep.subr.bf16.mxu0 %v2907_v1  ;;  %v2418_v16 = vld [vmem:[#allocation2 + $0x10] ss:$0 sm:$0xff] }
0x1d66   : > { %v2020_v22 = vsel %vm336_vm3, %v2017_v21, 0.0 }
0x1d67   : > { %2021 = vadd.xlane.f32.xlu0 %v2020_v22 }
0x1d7d   : > { %2118 = vrot.lane.b32.xlu0 %v2803_v30, %s2912_s10 }
0x1df4   : > { %v2022_v23 = vpop.xlane.xlu0 %2021 }
0x1df5   : > { %v2023_v24 = vmul.f32 0.03125, %v2022_v23  ;;  %v2420_v23 = vld [vmem:[#allocation2 + $0x12] ss:$0 sm:$0xff] }
0x1df7   : > { %v2024_v25 = vsub.f32 %v2017_v21, %v2023_v24 }
0x1df8   : > { %v2119_v42 = vpop.permute.xlu0 %2118 }
0x1df9   : > { %v2025_v26 = vmul.f32 %v2024_v25, %v2024_v25  ;;  %v2041_v39 = vmul.f32 %v2410_v38, %v2024_v25  ;;  %v2126_v45 = vsel %vm1201_vm10, %v2119_v42, 0 }
0x1dfb   : > { %v2026_v27 = vsel %vm336_vm3, %v2025_v26, 0.0 }
0x1dfc   : > { %2027 = vadd.xlane.f32.xlu1 %v2026_v27 }
0x1e0d   : > { %2120 = vrot.lane.b32.xlu1 %v2804_v28, %s2912_s10 }
0x1e89   : > { %v2028_v31 = vpop.xlane.xlu1 %2027 }
0x1e8a   : > { %v2029_v32 = vmul.f32 0.032258064, %v2028_v31 }
0x1e8c   : > { %2851 = vrsqrt.f32 %v2029_v32  ;;  %vm2032_vm13 = vcmp.eq.f32.partialorder %v2029_v32, inf  ;;  %v2035_v50 = vand.u32 2147483648, %v2029_v32  ;;  %vm2034_vm14 = vcmp.eq.f32.partialorder %v2029_v32, 0.0 }
0x1e8d   : > { %v2121_v46 = vpop.permute.xlu1 %2120 }
0x1e8e   : > { %v2129_v47 = vsel %vm1201_vm10, %v2121_v46, 0 }
0x1e96   : > { %v2852_v33 = vpop.eup %2851 }
0x1e97   : > { %v2031_v34 = vmul.f32 %v2852_v33, %v2029_v32 }
0x1e99   : > { %v2033_v35 = vsel %vm2032_vm13, %v2029_v32, %v2031_v34 }
0x1e9a   : > { %v2036_v36 = vsel %vm2034_vm14, %v2035_v50, %v2033_v35 }
0x1e9b   : > { %v2042_v37 = vadd.f32 1e-06, %v2036_v36 }
0x1e9d   : > { %2853 = vrcp.f32 %v2042_v37 }
0x1ea7   : > { %v2854_v40 = vpop.eup %2853 }
0x1ea8   : > { %v2044_v29 = vmul.f32 %v2854_v40, %v2041_v39 }
0x1eaa   : > { %v2049_v43 = vadd.f32 %v2411_v41, %v2044_v29 }
0x1eac   : > { %v2050_v44 = vpack.c.bf16 %v2049_v43, %v2049_v43 }
0x1eae   : > { %2729 = vmatmul.mubr.msk.bf16.vlgmr.msra.gmra.mrb[56].mxu0 %vm336_vm3, %v2050_v44 }
0x1eaf   : > { %2733 = vmatpush3.bf16.xpose.msra.mxu0 %v2126_v45  ;;  %2736 = vmatprep.mubr.msk.bf16.mxu0 %vm2908_vm0, %v2907_v1 }
0x1eb0   : > { %2734 = vmatprep.subr.bf16.mxu0 %v2907_v1 }
0x1eb7   : > { %2735 = vmatpush3.bf16.xpose.msra.mxu0 %v2129_v47 }
0x1f81   : > { %v2105_v52 = vpop.f32.mrb[56].mxu0 }
0x1f82   : > { %v2106_v53 = vadd.f32 %v2412_v51, %v2105_v52  ;;  %v2730_v54 = vpop.f32.mrb[57].mxu0 }
0x1f83   : > { %v2108_v55 = vpop.f32.mrb[58].mxu0 }
0x1f84   : > { %v2111_v56 = vmax.f32 %v2106_v53, 0.0  ;;  %v2731_v57 = vpop.f32.mrb[59].mxu0 }
0x1f86   : > { %v2112_v49 = vpack.c.bf16 %v2111_v56, %v2111_v56 }
0x1f88   : > { %2737 = vmatmul.mubr.msk.bf16.vlgmr.msra.gmra.mrb[60].mxu0 %vm1201_vm10, %v2112_v49 }
0x205b   : > { %v2165_v59 = vpop.f32.mrb[60].mxu0 }
0x205c   : > { %v2166_v60 = vadd.f32 %v2416_v58, %v2165_v59  ;;  %v2738_v61 = vpop.f32.mrb[61].mxu0 }
0x205d   : > { %v2168_v62 = vpop.f32.mrb[62].mxu0 }
0x205e   : > { %v2739_v63 = vpop.f32.mrb[63].mxu0  ;;  %v2171_v0 = vadd.f32 %v2166_v60, %v2017_v21 }
0x2060   : > { %v2174_v20 = vsel %vm336_vm3, %v2171_v0, 0.0 }
0x2061   : > { %2175 = vadd.xlane.f32.xlu0 %v2174_v20 }
0x20ee   : > { %v2176_v2 = vpop.xlane.xlu0 %2175 }
0x20ef   : > { %v2177_v48 = vmul.f32 0.03125, %v2176_v2 }
0x20f1   : > { %v2178_v3 = vsub.f32 %v2171_v0, %v2177_v48 }
0x20f3   : > { %v2179_v4 = vmul.f32 %v2178_v3, %v2178_v3  ;;  %v2195_v17 = vmul.f32 %v2418_v16, %v2178_v3 }
0x20f5   : > { %v2180_v5 = vsel %vm336_vm3, %v2179_v4, 0.0 }
0x20f6   : > { %2181 = vadd.xlane.f32.xlu1 %v2180_v5 }
0x2183   : > { %v2182_v8 = vpop.xlane.xlu1 %2181 }
0x2184   : > { %v2183_v9 = vmul.f32 0.032258064, %v2182_v8 }
0x2186   : > { %2855 = vrsqrt.f32 %v2183_v9  ;;  %vm2186_vm15 = vcmp.eq.f32.partialorder %v2183_v9, inf  ;;  %v2189_v12 = vand.u32 2147483648, %v2183_v9  ;;  %vm2188_vm0 = vcmp.eq.f32.partialorder %v2183_v9, 0.0 }
0x2190   : > { %v2856_v10 = vpop.eup %2855 }
0x2191   : > { %v2185_v11 = vmul.f32 %v2856_v10, %v2183_v9 }
0x2193   : > { %v2187_v13 = vsel %vm2186_vm15, %v2183_v9, %v2185_v11 }
0x2194   : > { %v2190_v14 = vsel %vm2188_vm0, %v2189_v12, %v2187_v13 }
0x2195   : > { %v2196_v15 = vadd.f32 1e-06, %v2190_v14 }
0x2197   : > { %2857 = vrcp.f32 %v2196_v15 }
0x21a1   : > { %v2858_v18 = vpop.eup %2857 }
0x21a2   : > { %v2198_v21 = vmul.f32 %v2858_v18, %v2195_v17 }
0x21a4   : > { %v2203_v22 = vadd.f32 %v2419_v19, %v2198_v21 }
0x21a6   : > { %v2208_v1 = vpack.c.bf16 %v2203_v22, %v2203_v22 }
0x21a8   : > { %2745 = vmatmul.mubr.msk.bf16.vlgmr.msra.gmra.mrb[60].mxu1 %vm336_vm3, %v2208_v1 }
0x227b   : > { %v2263_v24 = vpop.f32.mrb[60].mxu1 }
0x227c   : > { %v2264_v25 = vadd.f32 %v2420_v23, %v2263_v24  ;;  %v2746_v26 = vpop.f32.mrb[61].mxu1 }
0x227d   : > { %v2266_v27 = vpop.f32.mrb[62].mxu1 }
0x227e   : > { %2269 = vmax.xlane.f32.xlu0 %v2264_v25  ;;  %v2747_v30 = vpop.f32.mrb[63].mxu1 }
0x230b   : > { %v2270_v28 = vpop.xlane.xlu0 %2269 }
0x230c   : > { %v2271_v31 = vsub.f32 %v2264_v25, %v2270_v28 }
0x230e   : > { %v2272_v32 = vmul.f32 1.442695, %v2271_v31 }
0x2310   : > { %2859 = vpow2.f32 %v2272_v32 }
0x231a   : > { %v2860_v33 = vpop.eup %2859 }
0x231b   : > { %2274 = vadd.xlane.f32.xlu0 %v2860_v33 }
0x23a8   : > { %v2275_v34 = vpop.xlane.xlu0 %2274 }
0x23a9   : > { %2861 = vrcp.f32 %v2275_v34 }
0x23b3   : > { %v2862_v50 = vpop.eup %2861 }
0x23b4   : > { %v2277_v35 = vmul.f32 %v2862_v50, %v2860_v33 }
0x23b6   : > { %2278 = vst [vmem:[%s207_s20] sm:$0xff] %v2277_v35 }
0x23b7 PF: > { %s15_s15 = sadd.s32 1, %s2901_s15  }
0x23b8   : > { %p12_p3 = scmp.ge.s32.totalorder %s15_s15, 4  }
0x23ba   :  { %14 = sbr.rel (!%p12_p3) target bundleno = 1 (0x1), region = 71 }
0x23c1   :  { %2298 = vsyncpa [#allocation3], 1 }
0x23c2   :  { %2300 = vsyncpa [#allocation3 + $0x1], 1 }

</bundles_post_ra>
